<compile_context>
chip_gen: v7x
topology: tpu7x:2x2x1
jax: 0.10.0
libtpu: 0.0.40
codegen_flags: <defaults>
</compile_context>

<pallas_src>
import math
import functools

import jax
import jax.numpy as jnp
from jax.experimental import pallas as pl
from jax.experimental.pallas import tpu as pltpu


# -----------------------------------------------------------------------------
# Tiling helpers
# -----------------------------------------------------------------------------

def _round_up(x, m):
    return (x + m - 1) // m * m


def _tile_and_pad(dim, preferred, align):
    """Pick a tile size (multiple of `align`) and a padded dim it divides."""
    padded = _round_up(dim, align)
    if padded <= preferred:
        return padded, padded
    tile = preferred if padded % preferred == 0 else align
    return tile, _round_up(padded, tile)


# -----------------------------------------------------------------------------
# Tiled linear (bf16 matmul, f32 accumulate, fused bias + optional ReLU)
# -----------------------------------------------------------------------------

def _linear_kernel(x_ref, w_ref, b_ref, o_ref, acc_ref, *, relu):
    @pl.when(pl.program_id(2) == 0)
    def _():
        acc_ref[...] = jnp.zeros_like(acc_ref)

    acc_ref[...] += jnp.dot(x_ref[...], w_ref[...],
                            preferred_element_type=jnp.float32)

    @pl.when(pl.program_id(2) == pl.num_programs(2) - 1)
    def _():
        y = acc_ref[...] + b_ref[...]
        if relu:
            y = jnp.maximum(y, 0.0)
        o_ref[...] = y.astype(o_ref.dtype)


def linear(x2d, w, b, relu=False, out_dtype=jnp.bfloat16, tm=256, tn=256, tk=512):
    """y = x2d @ w + b (+ optional ReLU).  x2d: [M,K], w: [K,N], b: [N]."""
    M, K = x2d.shape
    N = w.shape[1]
    tm, Mp = _tile_and_pad(M, tm, 16)     # 16: bf16 sublane packing
    tk, Kp = _tile_and_pad(K, tk, 128)    # 128: lane width
    tn, Np = _tile_and_pad(N, tn, 128)

    xb = x2d.astype(jnp.bfloat16)
    wb = w.astype(jnp.bfloat16)
    bb = b.astype(jnp.float32).reshape(1, N)
    if (Mp, Kp) != (M, K):
        xb = jnp.pad(xb, ((0, Mp - M), (0, Kp - K)))
    if (Kp, Np) != (K, N):
        wb = jnp.pad(wb, ((0, Kp - K), (0, Np - N)))
    if Np != N:
        bb = jnp.pad(bb, ((0, 0), (0, Np - N)))

    out = pl.pallas_call(
        functools.partial(_linear_kernel, relu=relu),
        out_shape=jax.ShapeDtypeStruct((Mp, Np), out_dtype),
        grid=(Mp // tm, Np // tn, Kp // tk),
        in_specs=[
            pl.BlockSpec((tm, tk), lambda i, j, k: (i, k)),
            pl.BlockSpec((tk, tn), lambda i, j, k: (k, j)),
            pl.BlockSpec((1, tn), lambda i, j, k: (0, j)),
        ],
        out_specs=pl.BlockSpec((tm, tn), lambda i, j, k: (i, j)),
        scratch_shapes=[pltpu.VMEM((tm, tn), jnp.float32)],
        compiler_params=pltpu.CompilerParams(
            dimension_semantics=("parallel", "parallel", "arbitrary")),
    )(xb, wb, bb)
    if (Mp, Np) != (M, N):
        out = out[:M, :N]
    return out


# -----------------------------------------------------------------------------
# Fused feed-forward: relu(x @ w1 + b1) @ w2 + b2 in one kernel
# -----------------------------------------------------------------------------

def _ffn_kernel(x_ref, w1_ref, b1_ref, w2_ref, b2_ref, o_ref):
    h = jnp.dot(x_ref[...], w1_ref[...], preferred_element_type=jnp.float32)
    h = jnp.maximum(h + b1_ref[...], 0.0).astype(w2_ref.dtype)
    y = jnp.dot(h, w2_ref[...], preferred_element_type=jnp.float32) + b2_ref[...]
    o_ref[...] = y.astype(o_ref.dtype)


def feed_forward(x, p, tm=256):
    """Position-wise FFN; the [M, d_ff] intermediate never leaves VMEM."""
    # TODO(synk): for very large d_model/d_ff, tile the contraction dims instead
    # of keeping full w1/w2 resident in VMEM.
    B, S, D = x.shape
    d_ff = p["w1"].shape[1]
    M = B * S
    tm, Mp = _tile_and_pad(M, tm, 16)

    xb = x.reshape(M, D).astype(jnp.bfloat16)
    if Mp != M:
        xb = jnp.pad(xb, ((0, Mp - M), (0, 0)))

    out = pl.pallas_call(
        _ffn_kernel,
        out_shape=jax.ShapeDtypeStruct((Mp, D), jnp.bfloat16),
        grid=(Mp // tm,),
        in_specs=[
            pl.BlockSpec((tm, D), lambda i: (i, 0)),
            pl.BlockSpec((D, d_ff), lambda i: (0, 0)),
            pl.BlockSpec((1, d_ff), lambda i: (0, 0)),
            pl.BlockSpec((d_ff, D), lambda i: (0, 0)),
            pl.BlockSpec((1, D), lambda i: (0, 0)),
        ],
        out_specs=pl.BlockSpec((tm, D), lambda i: (i, 0)),
        compiler_params=pltpu.CompilerParams(dimension_semantics=("parallel",)),
    )(xb, p["w1"], p["b1"].reshape(1, d_ff), p["w2"], p["b2"].reshape(1, D))
    if Mp != M:
        out = out[:M]
    return out.reshape(B, S, D)


# -----------------------------------------------------------------------------
# Fused residual-add + LayerNorm, tiled over rows
# -----------------------------------------------------------------------------

def _add_ln_kernel(x_ref, r_ref, g_ref, b_ref, o_ref, *, eps):
    x = x_ref[...] + r_ref[...].astype(jnp.float32)
    mu = jnp.mean(x, axis=-1, keepdims=True)
    var = jnp.mean(jnp.square(x - mu), axis=-1, keepdims=True)
    y = (x - mu) * jax.lax.rsqrt(var + eps)
    o_ref[...] = (y * g_ref[...] + b_ref[...]).astype(o_ref.dtype)


def add_layer_norm(x, r, gamma, beta, eps=1e-5, tm=256):
    """LayerNorm(x + r) over last dim.  x: f32 [B,S,D], r: bf16 [B,S,D]."""
    B, S, D = x.shape
    M = B * S
    tm, Mp = _tile_and_pad(M, tm, 16)
    x2 = x.reshape(M, D).astype(jnp.float32)
    r2 = r.reshape(M, D)
    if Mp != M:
        x2 = jnp.pad(x2, ((0, Mp - M), (0, 0)))
        r2 = jnp.pad(r2, ((0, Mp - M), (0, 0)))
    out = pl.pallas_call(
        functools.partial(_add_ln_kernel, eps=eps),
        out_shape=jax.ShapeDtypeStruct((Mp, D), jnp.float32),
        grid=(Mp // tm,),
        in_specs=[
            pl.BlockSpec((tm, D), lambda i: (i, 0)),
            pl.BlockSpec((tm, D), lambda i: (i, 0)),
            pl.BlockSpec((1, D), lambda i: (0, 0)),
            pl.BlockSpec((1, D), lambda i: (0, 0)),
        ],
        out_specs=pl.BlockSpec((tm, D), lambda i: (i, 0)),
        compiler_params=pltpu.CompilerParams(dimension_semantics=("parallel",)),
    )(x2, r2, gamma.reshape(1, D), beta.reshape(1, D))
    if Mp != M:
        out = out[:M]
    return out.reshape(B, S, D)


# -----------------------------------------------------------------------------
# Attention: all heads per grid step, masks rebuilt in-kernel from key validity
# -----------------------------------------------------------------------------

def _attention_kernel(q_ref, k_ref, v_ref, m_ref, o_ref, *, scale, causal):
    q = q_ref[0]                       # [H, Sq, dk] bf16
    k = k_ref[0]                       # [H, Sk, dk] bf16
    v = v_ref[0]                       # [H, Sk, dk] bf16
    kmask = m_ref[0]                   # [1, Sk] int32 (1 = valid key)

    # fold 1/sqrt(dk) into q (Sq*dk elements instead of Sq*Sk score elements)
    qs = q * jnp.asarray(scale, q.dtype)

    # scores: contract over dk, batch over heads -> [H, Sq, Sk] (no in-kernel .T)
    s = jax.lax.dot_general(
        qs, k, dimension_numbers=(((2,), (2,)), ((0,), (0,))),
        preferred_element_type=jnp.float32)

    _, Sq, Sk = s.shape
    keep = (kmask != 0)[None, :, :]               # [1, 1, Sk]
    if causal:
        row = jax.lax.broadcasted_iota(jnp.int32, (1, Sq, Sk), 1)
        col = jax.lax.broadcasted_iota(jnp.int32, (1, Sq, Sk), 2)
        keep = jnp.logical_and(keep, col <= row)  # [1, Sq, Sk]
    s = jnp.where(keep, s, jnp.float32(-1e9))

    s = s - jnp.max(s, axis=-1, keepdims=True)
    p = jnp.exp(s)
    p = p * pl.reciprocal(jnp.sum(p, axis=-1, keepdims=True), approx=True)

    o = jax.lax.dot_general(
        p.astype(v.dtype), v, dimension_numbers=(((2,), (1,)), ((0,), (0,))),
        preferred_element_type=jnp.float32)       # [H, Sq, dk]
    o_ref[0] = o.astype(o_ref.dtype)


def scaled_dot_product_attention(q, k, v, key_valid, causal):
    """q: [B,H,Sq,dk], k/v: [B,H,Sk,dk] (bf16), key_valid: [B,Sk] (1=keep)."""
    # TODO(synk): for long sequences, switch to flash-style KV tiling with
    # online-softmax scratch to bound VMEM at O(tq*tk) (needed on v7x 64 MiB).
    B, H, Sq, dk = q.shape
    Sk = k.shape[2]
    scale = 1.0 / math.sqrt(dk)
    kvm = key_valid.astype(jnp.int32).reshape(B, 1, Sk)
    return pl.pallas_call(
        functools.partial(_attention_kernel, scale=scale, causal=causal),
        out_shape=jax.ShapeDtypeStruct((B, H, Sq, dk), jnp.bfloat16),
        grid=(B,),
        in_specs=[
            pl.BlockSpec((1, H, Sq, dk), lambda b: (b, 0, 0, 0)),
            pl.BlockSpec((1, H, Sk, dk), lambda b: (b, 0, 0, 0)),
            pl.BlockSpec((1, H, Sk, dk), lambda b: (b, 0, 0, 0)),
            pl.BlockSpec((1, 1, Sk), lambda b: (b, 0, 0)),
        ],
        out_specs=pl.BlockSpec((1, H, Sq, dk), lambda b: (b, 0, 0, 0)),
        compiler_params=pltpu.CompilerParams(dimension_semantics=("parallel",)),
    )(q, k, v, kvm)


# -----------------------------------------------------------------------------
# Model building blocks (JAX glue around the kernels)
# -----------------------------------------------------------------------------

def multi_head_attention(x_q, x_kv, key_valid, causal, p, h, self_attn):
    B, Sq, D = x_q.shape
    Sk = x_kv.shape[1]
    dk = D // h
    if self_attn:
        qkv = linear(x_q.reshape(B * Sq, D), p["wqkv"], p["bqkv"])   # fused QKV
        q, k, v = qkv[:, :D], qkv[:, D:2 * D], qkv[:, 2 * D:]
    else:
        q = linear(x_q.reshape(B * Sq, D), p["wq"], p["bq"])
        kv = linear(x_kv.reshape(B * Sk, D), p["wkv"], p["bkv"])     # fused K/V
        k, v = kv[:, :D], kv[:, D:]
    q = q.reshape(B, Sq, h, dk).transpose(0, 2, 1, 3)
    k = k.reshape(B, Sk, h, dk).transpose(0, 2, 1, 3)
    v = v.reshape(B, Sk, h, dk).transpose(0, 2, 1, 3)
    attn = scaled_dot_product_attention(q, k, v, key_valid, causal)  # [B,h,Sq,dk]
    attn = attn.transpose(0, 2, 1, 3).reshape(B * Sq, D)
    return linear(attn, p["wo"], p["bo"]).reshape(B, Sq, D)


def encoder_layer(x, src_key_valid, p, h):
    a = multi_head_attention(x, x, src_key_valid, False, p["self_attn"], h, True)
    x = add_layer_norm(x, a, p["ln1_g"], p["ln1_b"])
    f = feed_forward(x, p["ffn"])
    x = add_layer_norm(x, f, p["ln2_g"], p["ln2_b"])
    return x


def decoder_layer(x, memory, src_key_valid, tgt_key_valid, p, h):
    a = multi_head_attention(x, x, tgt_key_valid, True, p["self_attn"], h, True)
    x = add_layer_norm(x, a, p["ln1_g"], p["ln1_b"])
    c = multi_head_attention(x, memory, src_key_valid, False, p["cross_attn"], h, False)
    x = add_layer_norm(x, c, p["ln2_g"], p["ln2_b"])
    f = feed_forward(x, p["ffn"])
    x = add_layer_norm(x, f, p["ln3_g"], p["ln3_b"])
    return x


def positional_encoding(seq_len, d_model):
    pos = jnp.arange(seq_len, dtype=jnp.float32)[:, None]
    div = jnp.exp(jnp.arange(0, d_model, 2, dtype=jnp.float32)
                  * (-math.log(10000.0) / d_model))
    pe = jnp.zeros((seq_len, d_model), jnp.float32)
    pe = pe.at[:, 0::2].set(jnp.sin(pos * div))
    pe = pe.at[:, 1::2].set(jnp.cos(pos * div))
    return pe


def create_masks(src, tgt):
    """Mirrors Transformer.create_masks (padding id = 0, causal mask on tgt)."""
    src_mask = (src != 0)[:, None, :]                        # [B, 1, Ss]
    tgt_pad = (tgt != 0)[:, None, :]                         # [B, 1, St]
    St = tgt.shape[1]
    nopeak = jnp.tril(jnp.ones((St, St), dtype=bool))[None]  # [1, St, St]
    tgt_mask = tgt_pad & nopeak                              # [B, St, St]
    return src_mask, tgt_mask


def transformer_forward(params, src, tgt, src_mask, tgt_mask, *, h):
    d_model = params["src_embed"].shape[1]
    B, Ss = src.shape
    _, St = tgt.shape

    # Key-validity vectors (1 int per key): padding/causal masks are rebuilt
    # inside the attention kernel (no broadcast f32 [B,Sq,Sk] mask in HBM).
    src_key_valid = jnp.squeeze(src_mask, axis=1).astype(jnp.int32)   # [B, Ss]
    tgt_key_valid = (tgt != 0).astype(jnp.int32)                      # [B, St]

    # --- encode ---
    x = jnp.take(params["src_embed"], src, axis=0) * math.sqrt(d_model)
    x = x + positional_encoding(Ss, d_model)[None]
    for lp in params["encoder"]:
        x = encoder_layer(x, src_key_valid, lp, h)
    memory = x

    # --- decode ---
    y = jnp.take(params["tgt_embed"], tgt, axis=0) * math.sqrt(d_model)
    y = y + positional_encoding(St, d_model)[None]
    for lp in params["decoder"]:
        y = decoder_layer(y, memory, src_key_valid, tgt_key_valid, lp, h)

    # --- generator ---
    tgt_vocab = params["gen_w"].shape[1]
    logits = linear(y.reshape(B * St, d_model), params["gen_w"], params["gen_b"],
                    out_dtype=jnp.float32)
    return logits.reshape(B, St, tgt_vocab)


# -----------------------------------------------------------------------------
# Deterministic parameter init (xavier_uniform weights -> bf16, f32 biases/LN)
# -----------------------------------------------------------------------------

def _xavier(key, shape):
    fan_in, fan_out = shape[0], shape[1]
    limit = math.sqrt(6.0 / (fan_in + fan_out))
    return jax.random.uniform(key, shape, jnp.float32, -limit, limit)


def init_params(key, src_vocab, tgt_vocab, d_model, n_layers, d_ff):
    keys = iter(jax.random.split(key, 512))
    bf = jnp.bfloat16

    def attn_params():
        wq = _xavier(next(keys), (d_model, d_model))
        wk = _xavier(next(keys), (d_model, d_model))
        wv = _xavier(next(keys), (d_model, d_model))
        wo = _xavier(next(keys), (d_model, d_model))
        return {
            "wqkv": jnp.concatenate([wq, wk, wv], axis=1).astype(bf),
            "bqkv": jnp.zeros((3 * d_model,), jnp.float32),
            "wq": wq.astype(bf), "bq": jnp.zeros((d_model,), jnp.float32),
            "wkv": jnp.concatenate([wk, wv], axis=1).astype(bf),
            "bkv": jnp.zeros((2 * d_model,), jnp.float32),
            "wo": wo.astype(bf), "bo": jnp.zeros((d_model,), jnp.float32),
        }

    def ffn_params():
        return {
            "w1": _xavier(next(keys), (d_model, d_ff)).astype(bf),
            "b1": jnp.zeros((d_ff,), jnp.float32),
            "w2": _xavier(next(keys), (d_ff, d_model)).astype(bf),
            "b2": jnp.zeros((d_model,), jnp.float32),
        }

    def ln():
        return jnp.ones((d_model,), jnp.float32), jnp.zeros((d_model,), jnp.float32)

    encoder = []
    for _ in range(n_layers):
        g1, b1 = ln(); g2, b2 = ln()
        encoder.append({"self_attn": attn_params(), "ffn": ffn_params(),
                        "ln1_g": g1, "ln1_b": b1, "ln2_g": g2, "ln2_b": b2})

    decoder = []
    for _ in range(n_layers):
        g1, b1 = ln(); g2, b2 = ln(); g3, b3 = ln()
        decoder.append({"self_attn": attn_params(), "cross_attn": attn_params(),
                        "ffn": ffn_params(),
                        "ln1_g": g1, "ln1_b": b1, "ln2_g": g2, "ln2_b": b2,
                        "ln3_g": g3, "ln3_b": b3})

    return {
        "src_embed": _xavier(next(keys), (src_vocab, d_model)),
        "tgt_embed": _xavier(next(keys), (tgt_vocab, d_model)),
        "encoder": encoder,
        "decoder": decoder,
        "gen_w": _xavier(next(keys), (d_model, tgt_vocab)).astype(bf),
        "gen_b": jnp.zeros((tgt_vocab,), jnp.float32),
    }


# -----------------------------------------------------------------------------
# Main
# -----------------------------------------------------------------------------

if __name__ == "__main__":
    # Small, lane-dense demo shapes (d_model / vocab = 128 keep last dims vreg-full)
    SRC_VOCAB, TGT_VOCAB = 128, 128
    D_MODEL, N_LAYERS, D_FF, H = 128, 2, 256, 4
    B, S_SRC, S_TGT = 2, 16, 16

    root = jax.random.PRNGKey(0)
    k_param, k_src, k_tgt = jax.random.split(root, 3)

    params = init_params(k_param, SRC_VOCAB, TGT_VOCAB, D_MODEL, N_LAYERS, D_FF)

    src = jax.random.randint(k_src, (B, S_SRC), 1, SRC_VOCAB, dtype=jnp.int32)
    tgt = jax.random.randint(k_tgt, (B, S_TGT), 1, TGT_VOCAB, dtype=jnp.int32)
    # introduce some padding (token id 0) to exercise the masks
    src = src.at[1, -4:].set(0)
    tgt = tgt.at[1, -5:].set(0)

    src_mask, tgt_mask = create_masks(src, tgt)

    fwd = jax.jit(functools.partial(transformer_forward, h=H))
    logits = fwd(params, src, tgt, src_mask, tgt_mask)
    logits = jax.block_until_ready(logits)

    assert logits.shape == (B, S_TGT, TGT_VOCAB)
    assert bool(jnp.all(jnp.isfinite(logits)))
    print("KERNEL_OK")
</pallas_src>

<mosaic_0001>
module attributes {stable_mosaic.version = 11 : i64} {
  func.func @_linear_kernel(%arg0: i32, %arg1: i32, %arg2: i32, %arg3: memref<32x128xbf16, #tpu.memory_space<vmem>>, %arg4: memref<128x128xbf16, #tpu.memory_space<vmem>>, %arg5: memref<1x128xf32, #tpu.memory_space<vmem>>, %arg6: memref<32x128xbf16, #tpu.memory_space<vmem>>, %arg7: memref<32x128xf32, #tpu.memory_space<vmem>>) attributes {dimension_semantics = [#tpu.dimension_semantics<parallel>, #tpu.dimension_semantics<parallel>, #tpu.dimension_semantics<arbitrary>], iteration_bounds = array<i64: 1, 3, 1>, scalar_prefetch = 0 : i64, scratch_operands = 1 : i64, tpu.core_type = #tpu.core_type<tc>, window_params = [{transform_indices = @transform_0, window_bounds = array<i64: 32, 128>}, {transform_indices = @transform_1, window_bounds = array<i64: 128, 128>}, {transform_indices = @transform_2, window_bounds = array<i64: 1, 128>}, {transform_indices = @transform_3, window_bounds = array<i64: 32, 128>}]} {
    %c0_i32 = arith.constant 0 : i32
    %0 = arith.cmpi eq, %arg2, %c0_i32 : i32
    %1 = arith.extui %0 : i1 to i32
    %c0_i32_0 = arith.constant 0 : i32
    %2 = arith.cmpi ne, %1, %c0_i32_0 : i32
    scf.if %2 {
      %cst_10 = arith.constant 0.000000e+00 : f32
      %12 = vector.broadcast %cst_10 : f32 to vector<32x128xf32>
      %c0_11 = arith.constant 0 : index
      %c0_12 = arith.constant 0 : index
      %13 = vector.load %arg7[%c0_11, %c0_12] : memref<32x128xf32, #tpu.memory_space<vmem>>, vector<32x128xf32>
      tpu.vector_store %arg7[%c0_11, %c0_12], %12 {strides = array<i32>} : memref<32x128xf32, #tpu.memory_space<vmem>>, vector<32x128xf32>,
    } else {
    }
    %c0 = arith.constant 0 : index
    %c0_1 = arith.constant 0 : index
    %3 = vector.load %arg7[%c0, %c0_1] : memref<32x128xf32, #tpu.memory_space<vmem>>, vector<32x128xf32>
    %c0_2 = arith.constant 0 : index
    %c0_3 = arith.constant 0 : index
    %4 = vector.load %arg3[%c0_2, %c0_3] : memref<32x128xbf16, #tpu.memory_space<vmem>>, vector<32x128xbf16>
    %c0_4 = arith.constant 0 : index
    %c0_5 = arith.constant 0 : index
    %5 = vector.load %arg4[%c0_4, %c0_5] : memref<128x128xbf16, #tpu.memory_space<vmem>>, vector<128x128xbf16>
    %cst = arith.constant dense<0.000000e+00> : vector<32x128xf32>
    %6 = tpu.matmul %4, %5, %cst {dimension_numbers = #tpu.dot_dimension_numbers<[1], [0], [0], [1], [0, 0, 1, 1], [], []>} : vector<32x128xbf16>, vector<128x128xbf16>, vector<32x128xf32> -> vector<32x128xf32>
    %7 = arith.addf %3, %6 : vector<32x128xf32>
    %c0_6 = arith.constant 0 : index
    %c0_7 = arith.constant 0 : index
    %8 = vector.load %arg7[%c0_6, %c0_7] : memref<32x128xf32, #tpu.memory_space<vmem>>, vector<32x128xf32>
    tpu.vector_store %arg7[%c0_6, %c0_7], %7 {strides = array<i32>} : memref<32x128xf32, #tpu.memory_space<vmem>>, vector<32x128xf32>,
    %c0_i32_8 = arith.constant 0 : i32
    %9 = arith.cmpi eq, %arg2, %c0_i32_8 : i32
    %10 = arith.extui %9 : i1 to i32
    %c0_i32_9 = arith.constant 0 : i32
    %11 = arith.cmpi ne, %10, %c0_i32_9 : i32
    scf.if %11 {
      %c0_10 = arith.constant 0 : index
      %c0_11 = arith.constant 0 : index
      %12 = vector.load %arg7[%c0_10, %c0_11] : memref<32x128xf32, #tpu.memory_space<vmem>>, vector<32x128xf32>
      %c0_12 = arith.constant 0 : index
      %c0_13 = arith.constant 0 : index
      %13 = vector.load %arg5[%c0_12, %c0_13] : memref<1x128xf32, #tpu.memory_space<vmem>>, vector<1x128xf32>
      %14 = vector.broadcast %13 : vector<1x128xf32> to vector<32x128xf32>
      %15 = arith.addf %12, %14 : vector<32x128xf32>
      %16 = arith.truncf %15 : vector<32x128xf32> to vector<32x128xbf16>
      %c0_14 = arith.constant 0 : index
      %c0_15 = arith.constant 0 : index
      %17 = vector.load %arg6[%c0_14, %c0_15] : memref<32x128xbf16, #tpu.memory_space<vmem>>, vector<32x128xbf16>
      tpu.vector_store %arg6[%c0_14, %c0_15], %16 {strides = array<i32>} : memref<32x128xbf16, #tpu.memory_space<vmem>>, vector<32x128xbf16>,
    } else {
    }
    return
  }
  func.func @transform_0(%arg0: i32, %arg1: i32, %arg2: i32) -> (i32, i32) {
    %c0_i32 = arith.constant 0 : i32
    return %arg0, %arg2 : i32, i32
  }
  func.func @transform_1(%arg0: i32, %arg1: i32, %arg2: i32) -> (i32, i32) {
    %c0_i32 = arith.constant 0 : i32
    return %arg2, %arg1 : i32, i32
  }
  func.func @transform_2(%arg0: i32, %arg1: i32, %arg2: i32) -> (i32, i32) {
    %c0_i32 = arith.constant 0 : i32
    %c0_i32_0 = arith.constant 0 : i32
    return %c0_i32, %arg1 : i32, i32
  }
  func.func @transform_3(%arg0: i32, %arg1: i32, %arg2: i32) -> (i32, i32) {
    %c0_i32 = arith.constant 0 : i32
    return %arg0, %arg1 : i32, i32
  }
}

module attributes {stable_mosaic.version = 11 : i64} {
  func.func @_attention_kernel(%arg0: i32, %arg1: memref<1x4x16x32xbf16, #tpu.memory_space<vmem>>, %arg2: memref<1x4x16x32xbf16, #tpu.memory_space<vmem>>, %arg3: memref<1x4x16x32xbf16, #tpu.memory_space<vmem>>, %arg4: memref<1x1x16xi32, #tpu.memory_space<vmem>>, %arg5: memref<1x4x16x32xbf16, #tpu.memory_space<vmem>>) attributes {dimension_semantics = [#tpu.dimension_semantics<parallel>], iteration_bounds = array<i64: 2>, scalar_prefetch = 0 : i64, scratch_operands = 0 : i64, tpu.core_type = #tpu.core_type<tc>, window_params = [{transform_indices = @transform_0, window_bounds = array<i64: 1, 4, 16, 32>}, {transform_indices = @transform_1, window_bounds = array<i64: 1, 4, 16, 32>}, {transform_indices = @transform_2, window_bounds = array<i64: 1, 4, 16, 32>}, {transform_indices = @transform_3, window_bounds = array<i64: 1, 1, 16>}, {transform_indices = @transform_4, window_bounds = array<i64: 1, 4, 16, 32>}]} {
    %c0 = arith.constant 0 : index
    %c0_0 = arith.constant 0 : index
    %c0_1 = arith.constant 0 : index
    %c0_2 = arith.constant 0 : index
    %0 = vector.load %arg1[%c0, %c0_0, %c0_1, %c0_2] : memref<1x4x16x32xbf16, #tpu.memory_space<vmem>>, vector<1x4x16x32xbf16>
    %1 = vector.shape_cast %0 : vector<1x4x16x32xbf16> to vector<4x16x32xbf16>
    %c0_3 = arith.constant 0 : index
    %c0_4 = arith.constant 0 : index
    %c0_5 = arith.constant 0 : index
    %c0_6 = arith.constant 0 : index
    %2 = vector.load %arg2[%c0_3, %c0_4, %c0_5, %c0_6] : memref<1x4x16x32xbf16, #tpu.memory_space<vmem>>, vector<1x4x16x32xbf16>
    %3 = vector.shape_cast %2 : vector<1x4x16x32xbf16> to vector<4x16x32xbf16>
    %c0_7 = arith.constant 0 : index
    %c0_8 = arith.constant 0 : index
    %c0_9 = arith.constant 0 : index
    %c0_10 = arith.constant 0 : index
    %4 = vector.load %arg3[%c0_7, %c0_8, %c0_9, %c0_10] : memref<1x4x16x32xbf16, #tpu.memory_space<vmem>>, vector<1x4x16x32xbf16>
    %5 = vector.shape_cast %4 : vector<1x4x16x32xbf16> to vector<4x16x32xbf16>
    %c0_11 = arith.constant 0 : index
    %c0_12 = arith.constant 0 : index
    %c0_13 = arith.constant 0 : index
    %6 = vector.load %arg4[%c0_11, %c0_12, %c0_13] : memref<1x1x16xi32, #tpu.memory_space<vmem>>, vector<1x1x16xi32>
    %7 = vector.shape_cast %6 : vector<1x1x16xi32> to vector<1x16xi32>
    %cst = arith.constant 1.767580e-01 : bf16
    %8 = vector.broadcast %cst : bf16 to vector<4x16x32xbf16>
    %9 = arith.mulf %1, %8 : vector<4x16x32xbf16>
    %cst_14 = arith.constant dense<0.000000e+00> : vector<4x16x16xf32>
    %10 = tpu.matmul %9, %3, %cst_14 {dimension_numbers = #tpu.dot_dimension_numbers<[2], [2], [1], [1], [0, 0, 0, 1, 1, 1], [0], [0]>} : vector<4x16x32xbf16>, vector<4x16x32xbf16>, vector<4x16x16xf32> -> vector<4x16x16xf32>
    %c0_i32 = arith.constant 0 : i32
    %11 = vector.broadcast %c0_i32 : i32 to vector<1x16xi32>
    %12 = arith.cmpi ne, %7, %11 : vector<1x16xi32>
    %13 = vector.shape_cast %12 : vector<1x16xi1> to vector<1x1x16xi1>
    %14 = tpu.iota {dimensions = array<i32: 1>} : vector<1x16x16xi32>
    %15 = tpu.iota {dimensions = array<i32: 2>} : vector<1x16x16xi32>
    %16 = arith.cmpi sle, %15, %14 : vector<1x16x16xi32>
    %17 = vector.broadcast %13 : vector<1x1x16xi1> to vector<1x16x16xi1>
    %18 = arith.andi %17, %16 : vector<1x16x16xi1>
    %cst_15 = arith.constant -1.000000e+09 : f32
    %19 = vector.shape_cast %18 : vector<1x16x16xi1> to vector<1x16x16xi1>
    %20 = vector.broadcast %19 : vector<1x16x16xi1> to vector<4x16x16xi1>
    %21 = vector.broadcast %cst_15 : f32 to vector<4x16x16xf32>
    %22 = arith.select %20, %10, %21 : vector<4x16x16xi1>, vector<4x16x16xf32>
    %cst_16 = arith.constant dense<0xFF800000> : vector<4x16xf32>
    %23 = vector.multi_reduction <maximumf>, %22, %cst_16 [2] : vector<4x16x16xf32> to vector<4x16xf32>
    %24 = vector.shape_cast %23 : vector<4x16xf32> to vector<4x16x1xf32>
    %25 = vector.broadcast %24 : vector<4x16x1xf32> to vector<4x16x16xf32>
    %26 = arith.subf %22, %25 : vector<4x16x16xf32>
    %27 = math.exp %26 : vector<4x16x16xf32>
    %cst_17 = arith.constant dense<0.000000e+00> : vector<4x16xf32>
    %28 = vector.multi_reduction <add>, %27, %cst_17 [2] : vector<4x16x16xf32> to vector<4x16xf32>
    %29 = vector.shape_cast %28 : vector<4x16xf32> to vector<4x16x1xf32>
    %30 = tpu.reciprocal %29 {approx = true} : vector<4x16x1xf32> -> vector<4x16x1xf32>
    %31 = vector.broadcast %30 : vector<4x16x1xf32> to vector<4x16x16xf32>
    %32 = arith.mulf %27, %31 : vector<4x16x16xf32>
    %33 = arith.truncf %32 : vector<4x16x16xf32> to vector<4x16x16xbf16>
    %cst_18 = arith.constant dense<0.000000e+00> : vector<4x16x32xf32>
    %34 = tpu.matmul %33, %5, %cst_18 {dimension_numbers = #tpu.dot_dimension_numbers<[2], [1], [1], [2], [0, 0, 0, 1, 1, 2], [0], [0]>} : vector<4x16x16xbf16>, vector<4x16x32xbf16>, vector<4x16x32xf32> -> vector<4x16x32xf32>
    %35 = arith.truncf %34 : vector<4x16x32xf32> to vector<4x16x32xbf16>
    %c0_19 = arith.constant 0 : index
    %c0_20 = arith.constant 0 : index
    %c0_21 = arith.constant 0 : index
    %c0_22 = arith.constant 0 : index
    %36 = vector.load %arg5[%c0_19, %c0_20, %c0_21, %c0_22] : memref<1x4x16x32xbf16, #tpu.memory_space<vmem>>, vector<1x4x16x32xbf16>
    %37 = vector.shape_cast %36 : vector<1x4x16x32xbf16> to vector<4x16x32xbf16>
    %38 = vector.shape_cast %35 : vector<4x16x32xbf16> to vector<1x4x16x32xbf16>
    tpu.vector_store %arg5[%c0_19, %c0_20, %c0_21, %c0_22], %38 {strides = array<i32>} : memref<1x4x16x32xbf16, #tpu.memory_space<vmem>>, vector<1x4x16x32xbf16>,
    return
  }
  func.func @transform_0(%arg0: i32) -> (i32, i32, i32, i32) {
    %c0_i32 = arith.constant 0 : i32
    %c0_i32_0 = arith.constant 0 : i32
    %c0_i32_1 = arith.constant 0 : i32
    %c0_i32_2 = arith.constant 0 : i32
    return %arg0, %c0_i32, %c0_i32_0, %c0_i32_1 : i32, i32, i32, i32
  }
  func.func @transform_1(%arg0: i32) -> (i32, i32, i32, i32) {
    %c0_i32 = arith.constant 0 : i32
    %c0_i32_0 = arith.constant 0 : i32
    %c0_i32_1 = arith.constant 0 : i32
    %c0_i32_2 = arith.constant 0 : i32
    return %arg0, %c0_i32, %c0_i32_0, %c0_i32_1 : i32, i32, i32, i32
  }
  func.func @transform_2(%arg0: i32) -> (i32, i32, i32, i32) {
    %c0_i32 = arith.constant 0 : i32
    %c0_i32_0 = arith.constant 0 : i32
    %c0_i32_1 = arith.constant 0 : i32
    %c0_i32_2 = arith.constant 0 : i32
    return %arg0, %c0_i32, %c0_i32_0, %c0_i32_1 : i32, i32, i32, i32
  }
  func.func @transform_3(%arg0: i32) -> (i32, i32, i32) {
    %c0_i32 = arith.constant 0 : i32
    %c0_i32_0 = arith.constant 0 : i32
    %c0_i32_1 = arith.constant 0 : i32
    return %arg0, %c0_i32, %c0_i32_0 : i32, i32, i32
  }
  func.func @transform_4(%arg0: i32) -> (i32, i32, i32, i32) {
    %c0_i32 = arith.constant 0 : i32
    %c0_i32_0 = arith.constant 0 : i32
    %c0_i32_1 = arith.constant 0 : i32
    %c0_i32_2 = arith.constant 0 : i32
    return %arg0, %c0_i32, %c0_i32_0, %c0_i32_1 : i32, i32, i32, i32
  }
}

module attributes {stable_mosaic.version = 11 : i64} {
  func.func @_linear_kernel(%arg0: i32, %arg1: i32, %arg2: i32, %arg3: memref<32x128xbf16, #tpu.memory_space<vmem>>, %arg4: memref<128x128xbf16, #tpu.memory_space<vmem>>, %arg5: memref<1x128xf32, #tpu.memory_space<vmem>>, %arg6: memref<32x128xbf16, #tpu.memory_space<vmem>>, %arg7: memref<32x128xf32, #tpu.memory_space<vmem>>) attributes {dimension_semantics = [#tpu.dimension_semantics<parallel>, #tpu.dimension_semantics<parallel>, #tpu.dimension_semantics<arbitrary>], iteration_bounds = array<i64: 1, 1, 1>, scalar_prefetch = 0 : i64, scratch_operands = 1 : i64, tpu.core_type = #tpu.core_type<tc>, window_params = [{transform_indices = @transform_0, window_bounds = array<i64: 32, 128>}, {transform_indices = @transform_1, window_bounds = array<i64: 128, 128>}, {transform_indices = @transform_2, window_bounds = array<i64: 1, 128>}, {transform_indices = @transform_3, window_bounds = array<i64: 32, 128>}]} {
    %c0_i32 = arith.constant 0 : i32
    %0 = arith.cmpi eq, %arg2, %c0_i32 : i32
    %1 = arith.extui %0 : i1 to i32
    %c0_i32_0 = arith.constant 0 : i32
    %2 = arith.cmpi ne, %1, %c0_i32_0 : i32
    scf.if %2 {
      %cst_10 = arith.constant 0.000000e+00 : f32
      %12 = vector.broadcast %cst_10 : f32 to vector<32x128xf32>
      %c0_11 = arith.constant 0 : index
      %c0_12 = arith.constant 0 : index
      %13 = vector.load %arg7[%c0_11, %c0_12] : memref<32x128xf32, #tpu.memory_space<vmem>>, vector<32x128xf32>
      tpu.vector_store %arg7[%c0_11, %c0_12], %12 {strides = array<i32>} : memref<32x128xf32, #tpu.memory_space<vmem>>, vector<32x128xf32>,
    } else {
    }
    %c0 = arith.constant 0 : index
    %c0_1 = arith.constant 0 : index
    %3 = vector.load %arg7[%c0, %c0_1] : memref<32x128xf32, #tpu.memory_space<vmem>>, vector<32x128xf32>
    %c0_2 = arith.constant 0 : index
    %c0_3 = arith.constant 0 : index
    %4 = vector.load %arg3[%c0_2, %c0_3] : memref<32x128xbf16, #tpu.memory_space<vmem>>, vector<32x128xbf16>
    %c0_4 = arith.constant 0 : index
    %c0_5 = arith.constant 0 : index
    %5 = vector.load %arg4[%c0_4, %c0_5] : memref<128x128xbf16, #tpu.memory_space<vmem>>, vector<128x128xbf16>
    %cst = arith.constant dense<0.000000e+00> : vector<32x128xf32>
    %6 = tpu.matmul %4, %5, %cst {dimension_numbers = #tpu.dot_dimension_numbers<[1], [0], [0], [1], [0, 0, 1, 1], [], []>} : vector<32x128xbf16>, vector<128x128xbf16>, vector<32x128xf32> -> vector<32x128xf32>
    %7 = arith.addf %3, %6 : vector<32x128xf32>
    %c0_6 = arith.constant 0 : index
    %c0_7 = arith.constant 0 : index
    %8 = vector.load %arg7[%c0_6, %c0_7] : memref<32x128xf32, #tpu.memory_space<vmem>>, vector<32x128xf32>
    tpu.vector_store %arg7[%c0_6, %c0_7], %7 {strides = array<i32>} : memref<32x128xf32, #tpu.memory_space<vmem>>, vector<32x128xf32>,
    %c0_i32_8 = arith.constant 0 : i32
    %9 = arith.cmpi eq, %arg2, %c0_i32_8 : i32
    %10 = arith.extui %9 : i1 to i32
    %c0_i32_9 = arith.constant 0 : i32
    %11 = arith.cmpi ne, %10, %c0_i32_9 : i32
    scf.if %11 {
      %c0_10 = arith.constant 0 : index
      %c0_11 = arith.constant 0 : index
      %12 = vector.load %arg7[%c0_10, %c0_11] : memref<32x128xf32, #tpu.memory_space<vmem>>, vector<32x128xf32>
      %c0_12 = arith.constant 0 : index
      %c0_13 = arith.constant 0 : index
      %13 = vector.load %arg5[%c0_12, %c0_13] : memref<1x128xf32, #tpu.memory_space<vmem>>, vector<1x128xf32>
      %14 = vector.broadcast %13 : vector<1x128xf32> to vector<32x128xf32>
      %15 = arith.addf %12, %14 : vector<32x128xf32>
      %16 = arith.truncf %15 : vector<32x128xf32> to vector<32x128xbf16>
      %c0_14 = arith.constant 0 : index
      %c0_15 = arith.constant 0 : index
      %17 = vector.load %arg6[%c0_14, %c0_15] : memref<32x128xbf16, #tpu.memory_space<vmem>>, vector<32x128xbf16>
      tpu.vector_store %arg6[%c0_14, %c0_15], %16 {strides = array<i32>} : memref<32x128xbf16, #tpu.memory_space<vmem>>, vector<32x128xbf16>,
    } else {
    }
    return
  }
  func.func @transform_0(%arg0: i32, %arg1: i32, %arg2: i32) -> (i32, i32) {
    %c0_i32 = arith.constant 0 : i32
    return %arg0, %arg2 : i32, i32
  }
  func.func @transform_1(%arg0: i32, %arg1: i32, %arg2: i32) -> (i32, i32) {
    %c0_i32 = arith.constant 0 : i32
    return %arg2, %arg1 : i32, i32
  }
  func.func @transform_2(%arg0: i32, %arg1: i32, %arg2: i32) -> (i32, i32) {
    %c0_i32 = arith.constant 0 : i32
    %c0_i32_0 = arith.constant 0 : i32
    return %c0_i32, %arg1 : i32, i32
  }
  func.func @transform_3(%arg0: i32, %arg1: i32, %arg2: i32) -> (i32, i32) {
    %c0_i32 = arith.constant 0 : i32
    return %arg0, %arg1 : i32, i32
  }
}

module attributes {stable_mosaic.version = 11 : i64} {
  func.func @_add_ln_kernel(%arg0: i32, %arg1: memref<32x128xf32, #tpu.memory_space<vmem>>, %arg2: memref<32x128xbf16, #tpu.memory_space<vmem>>, %arg3: memref<1x128xf32, #tpu.memory_space<vmem>>, %arg4: memref<1x128xf32, #tpu.memory_space<vmem>>, %arg5: memref<32x128xf32, #tpu.memory_space<vmem>>) attributes {dimension_semantics = [#tpu.dimension_semantics<parallel>], iteration_bounds = array<i64: 1>, scalar_prefetch = 0 : i64, scratch_operands = 0 : i64, tpu.core_type = #tpu.core_type<tc>, window_params = [{transform_indices = @transform_0, window_bounds = array<i64: 32, 128>}, {transform_indices = @transform_1, window_bounds = array<i64: 32, 128>}, {pipeline_mode = #tpu.pipeline_mode<synchronous>, transform_indices = @transform_2, window_bounds = array<i64: 1, 128>}, {pipeline_mode = #tpu.pipeline_mode<synchronous>, transform_indices = @transform_3, window_bounds = array<i64: 1, 128>}, {transform_indices = @transform_4, window_bounds = array<i64: 32, 128>}]} {
    %c0 = arith.constant 0 : index
    %c0_0 = arith.constant 0 : index
    %0 = vector.load %arg1[%c0, %c0_0] : memref<32x128xf32, #tpu.memory_space<vmem>>, vector<32x128xf32>
    %c0_1 = arith.constant 0 : index
    %c0_2 = arith.constant 0 : index
    %1 = vector.load %arg2[%c0_1, %c0_2] : memref<32x128xbf16, #tpu.memory_space<vmem>>, vector<32x128xbf16>
    %2 = arith.extf %1 : vector<32x128xbf16> to vector<32x128xf32>
    %3 = arith.addf %0, %2 : vector<32x128xf32>
    %cst = arith.constant dense<0.000000e+00> : vector<32xf32>
    %4 = vector.multi_reduction <add>, %3, %cst [1] : vector<32x128xf32> to vector<32xf32>
    %5 = vector.shape_cast %4 : vector<32xf32> to vector<32x1xf32>
    %cst_3 = arith.constant 1.280000e+02 : f32
    %6 = vector.broadcast %cst_3 : f32 to vector<32x1xf32>
    %7 = arith.divf %5, %6 : vector<32x1xf32>
    %8 = vector.broadcast %7 : vector<32x1xf32> to vector<32x128xf32>
    %9 = arith.subf %3, %8 : vector<32x128xf32>
    %10 = arith.mulf %9, %9 : vector<32x128xf32>
    %cst_4 = arith.constant dense<0.000000e+00> : vector<32xf32>
    %11 = vector.multi_reduction <add>, %10, %cst_4 [1] : vector<32x128xf32> to vector<32xf32>
    %12 = vector.shape_cast %11 : vector<32xf32> to vector<32x1xf32>
    %cst_5 = arith.constant 1.280000e+02 : f32
    %13 = vector.broadcast %cst_5 : f32 to vector<32x1xf32>
    %14 = arith.divf %12, %13 : vector<32x1xf32>
    %15 = vector.broadcast %7 : vector<32x1xf32> to vector<32x128xf32>
    %16 = arith.subf %3, %15 : vector<32x128xf32>
    %cst_6 = arith.constant 9.99999974E-6 : f32
    %17 = vector.broadcast %cst_6 : f32 to vector<32x1xf32>
    %18 = arith.addf %14, %17 : vector<32x1xf32>
    %19 = math.rsqrt %18 : vector<32x1xf32>
    %20 = vector.broadcast %19 : vector<32x1xf32> to vector<32x128xf32>
    %21 = arith.mulf %16, %20 : vector<32x128xf32>
    %c0_7 = arith.constant 0 : index
    %c0_8 = arith.constant 0 : index
    %22 = vector.load %arg3[%c0_7, %c0_8] : memref<1x128xf32, #tpu.memory_space<vmem>>, vector<1x128xf32>
    %23 = vector.broadcast %22 : vector<1x128xf32> to vector<32x128xf32>
    %24 = arith.mulf %21, %23 : vector<32x128xf32>
    %c0_9 = arith.constant 0 : index
    %c0_10 = arith.constant 0 : index
    %25 = vector.load %arg4[%c0_9, %c0_10] : memref<1x128xf32, #tpu.memory_space<vmem>>, vector<1x128xf32>
    %26 = vector.broadcast %25 : vector<1x128xf32> to vector<32x128xf32>
    %27 = arith.addf %24, %26 : vector<32x128xf32>
    %c0_11 = arith.constant 0 : index
    %c0_12 = arith.constant 0 : index
    %28 = vector.load %arg5[%c0_11, %c0_12] : memref<32x128xf32, #tpu.memory_space<vmem>>, vector<32x128xf32>
    tpu.vector_store %arg5[%c0_11, %c0_12], %27 {strides = array<i32>} : memref<32x128xf32, #tpu.memory_space<vmem>>, vector<32x128xf32>,
    return
  }
  func.func @transform_0(%arg0: i32) -> (i32, i32) {
    %c0_i32 = arith.constant 0 : i32
    %c0_i32_0 = arith.constant 0 : i32
    return %arg0, %c0_i32 : i32, i32
  }
  func.func @transform_1(%arg0: i32) -> (i32, i32) {
    %c0_i32 = arith.constant 0 : i32
    %c0_i32_0 = arith.constant 0 : i32
    return %arg0, %c0_i32 : i32, i32
  }
  func.func @transform_2(%arg0: i32) -> (i32, i32) {
    %c0_i32 = arith.constant 0 : i32
    %c0_i32_0 = arith.constant 0 : i32
    %c0_i32_1 = arith.constant 0 : i32
    return %c0_i32, %c0_i32_0 : i32, i32
  }
  func.func @transform_3(%arg0: i32) -> (i32, i32) {
    %c0_i32 = arith.constant 0 : i32
    %c0_i32_0 = arith.constant 0 : i32
    %c0_i32_1 = arith.constant 0 : i32
    return %c0_i32, %c0_i32_0 : i32, i32
  }
  func.func @transform_4(%arg0: i32) -> (i32, i32) {
    %c0_i32 = arith.constant 0 : i32
    %c0_i32_0 = arith.constant 0 : i32
    return %arg0, %c0_i32 : i32, i32
  }
}

module attributes {stable_mosaic.version = 11 : i64} {
  func.func @_attention_kernel(%arg0: i32, %arg1: memref<1x4x16x32xbf16, #tpu.memory_space<vmem>>, %arg2: memref<1x4x16x32xbf16, #tpu.memory_space<vmem>>, %arg3: memref<1x4x16x32xbf16, #tpu.memory_space<vmem>>, %arg4: memref<1x1x16xi32, #tpu.memory_space<vmem>>, %arg5: memref<1x4x16x32xbf16, #tpu.memory_space<vmem>>) attributes {dimension_semantics = [#tpu.dimension_semantics<parallel>], iteration_bounds = array<i64: 2>, scalar_prefetch = 0 : i64, scratch_operands = 0 : i64, tpu.core_type = #tpu.core_type<tc>, window_params = [{transform_indices = @transform_0, window_bounds = array<i64: 1, 4, 16, 32>}, {transform_indices = @transform_1, window_bounds = array<i64: 1, 4, 16, 32>}, {transform_indices = @transform_2, window_bounds = array<i64: 1, 4, 16, 32>}, {transform_indices = @transform_3, window_bounds = array<i64: 1, 1, 16>}, {transform_indices = @transform_4, window_bounds = array<i64: 1, 4, 16, 32>}]} {
    %c0 = arith.constant 0 : index
    %c0_0 = arith.constant 0 : index
    %c0_1 = arith.constant 0 : index
    %c0_2 = arith.constant 0 : index
    %0 = vector.load %arg1[%c0, %c0_0, %c0_1, %c0_2] : memref<1x4x16x32xbf16, #tpu.memory_space<vmem>>, vector<1x4x16x32xbf16>
    %1 = vector.shape_cast %0 : vector<1x4x16x32xbf16> to vector<4x16x32xbf16>
    %c0_3 = arith.constant 0 : index
    %c0_4 = arith.constant 0 : index
    %c0_5 = arith.constant 0 : index
    %c0_6 = arith.constant 0 : index
    %2 = vector.load %arg2[%c0_3, %c0_4, %c0_5, %c0_6] : memref<1x4x16x32xbf16, #tpu.memory_space<vmem>>, vector<1x4x16x32xbf16>
    %3 = vector.shape_cast %2 : vector<1x4x16x32xbf16> to vector<4x16x32xbf16>
    %c0_7 = arith.constant 0 : index
    %c0_8 = arith.constant 0 : index
    %c0_9 = arith.constant 0 : index
    %c0_10 = arith.constant 0 : index
    %4 = vector.load %arg3[%c0_7, %c0_8, %c0_9, %c0_10] : memref<1x4x16x32xbf16, #tpu.memory_space<vmem>>, vector<1x4x16x32xbf16>
    %5 = vector.shape_cast %4 : vector<1x4x16x32xbf16> to vector<4x16x32xbf16>
    %c0_11 = arith.constant 0 : index
    %c0_12 = arith.constant 0 : index
    %c0_13 = arith.constant 0 : index
    %6 = vector.load %arg4[%c0_11, %c0_12, %c0_13] : memref<1x1x16xi32, #tpu.memory_space<vmem>>, vector<1x1x16xi32>
    %7 = vector.shape_cast %6 : vector<1x1x16xi32> to vector<1x16xi32>
    %cst = arith.constant 1.767580e-01 : bf16
    %8 = vector.broadcast %cst : bf16 to vector<4x16x32xbf16>
    %9 = arith.mulf %1, %8 : vector<4x16x32xbf16>
    %cst_14 = arith.constant dense<0.000000e+00> : vector<4x16x16xf32>
    %10 = tpu.matmul %9, %3, %cst_14 {dimension_numbers = #tpu.dot_dimension_numbers<[2], [2], [1], [1], [0, 0, 0, 1, 1, 1], [0], [0]>} : vector<4x16x32xbf16>, vector<4x16x32xbf16>, vector<4x16x16xf32> -> vector<4x16x16xf32>
    %c0_i32 = arith.constant 0 : i32
    %11 = vector.broadcast %c0_i32 : i32 to vector<1x16xi32>
    %12 = arith.cmpi ne, %7, %11 : vector<1x16xi32>
    %13 = vector.shape_cast %12 : vector<1x16xi1> to vector<1x1x16xi1>
    %cst_15 = arith.constant -1.000000e+09 : f32
    %14 = vector.shape_cast %13 : vector<1x1x16xi1> to vector<1x1x16xi1>
    %15 = vector.broadcast %14 : vector<1x1x16xi1> to vector<4x16x16xi1>
    %16 = vector.broadcast %cst_15 : f32 to vector<4x16x16xf32>
    %17 = arith.select %15, %10, %16 : vector<4x16x16xi1>, vector<4x16x16xf32>
    %cst_16 = arith.constant dense<0xFF800000> : vector<4x16xf32>
    %18 = vector.multi_reduction <maximumf>, %17, %cst_16 [2] : vector<4x16x16xf32> to vector<4x16xf32>
    %19 = vector.shape_cast %18 : vector<4x16xf32> to vector<4x16x1xf32>
    %20 = vector.broadcast %19 : vector<4x16x1xf32> to vector<4x16x16xf32>
    %21 = arith.subf %17, %20 : vector<4x16x16xf32>
    %22 = math.exp %21 : vector<4x16x16xf32>
    %cst_17 = arith.constant dense<0.000000e+00> : vector<4x16xf32>
    %23 = vector.multi_reduction <add>, %22, %cst_17 [2] : vector<4x16x16xf32> to vector<4x16xf32>
    %24 = vector.shape_cast %23 : vector<4x16xf32> to vector<4x16x1xf32>
    %25 = tpu.reciprocal %24 {approx = true} : vector<4x16x1xf32> -> vector<4x16x1xf32>
    %26 = vector.broadcast %25 : vector<4x16x1xf32> to vector<4x16x16xf32>
    %27 = arith.mulf %22, %26 : vector<4x16x16xf32>
    %28 = arith.truncf %27 : vector<4x16x16xf32> to vector<4x16x16xbf16>
    %cst_18 = arith.constant dense<0.000000e+00> : vector<4x16x32xf32>
    %29 = tpu.matmul %28, %5, %cst_18 {dimension_numbers = #tpu.dot_dimension_numbers<[2], [1], [1], [2], [0, 0, 0, 1, 1, 2], [0], [0]>} : vector<4x16x16xbf16>, vector<4x16x32xbf16>, vector<4x16x32xf32> -> vector<4x16x32xf32>
    %30 = arith.truncf %29 : vector<4x16x32xf32> to vector<4x16x32xbf16>
    %c0_19 = arith.constant 0 : index
    %c0_20 = arith.constant 0 : index
    %c0_21 = arith.constant 0 : index
    %c0_22 = arith.constant 0 : index
    %31 = vector.load %arg5[%c0_19, %c0_20, %c0_21, %c0_22] : memref<1x4x16x32xbf16, #tpu.memory_space<vmem>>, vector<1x4x16x32xbf16>
    %32 = vector.shape_cast %31 : vector<1x4x16x32xbf16> to vector<4x16x32xbf16>
    %33 = vector.shape_cast %30 : vector<4x16x32xbf16> to vector<1x4x16x32xbf16>
    tpu.vector_store %arg5[%c0_19, %c0_20, %c0_21, %c0_22], %33 {strides = array<i32>} : memref<1x4x16x32xbf16, #tpu.memory_space<vmem>>, vector<1x4x16x32xbf16>,
    return
  }
  func.func @transform_0(%arg0: i32) -> (i32, i32, i32, i32) {
    %c0_i32 = arith.constant 0 : i32
    %c0_i32_0 = arith.constant 0 : i32
    %c0_i32_1 = arith.constant 0 : i32
    %c0_i32_2 = arith.constant 0 : i32
    return %arg0, %c0_i32, %c0_i32_0, %c0_i32_1 : i32, i32, i32, i32
  }
  func.func @transform_1(%arg0: i32) -> (i32, i32, i32, i32) {
    %c0_i32 = arith.constant 0 : i32
    %c0_i32_0 = arith.constant 0 : i32
    %c0_i32_1 = arith.constant 0 : i32
    %c0_i32_2 = arith.constant 0 : i32
    return %arg0, %c0_i32, %c0_i32_0, %c0_i32_1 : i32, i32, i32, i32
  }
  func.func @transform_2(%arg0: i32) -> (i32, i32, i32, i32) {
    %c0_i32 = arith.constant 0 : i32
    %c0_i32_0 = arith.constant 0 : i32
    %c0_i32_1 = arith.constant 0 : i32
    %c0_i32_2 = arith.constant 0 : i32
    return %arg0, %c0_i32, %c0_i32_0, %c0_i32_1 : i32, i32, i32, i32
  }
  func.func @transform_3(%arg0: i32) -> (i32, i32, i32) {
    %c0_i32 = arith.constant 0 : i32
    %c0_i32_0 = arith.constant 0 : i32
    %c0_i32_1 = arith.constant 0 : i32
    return %arg0, %c0_i32, %c0_i32_0 : i32, i32, i32
  }
  func.func @transform_4(%arg0: i32) -> (i32, i32, i32, i32) {
    %c0_i32 = arith.constant 0 : i32
    %c0_i32_0 = arith.constant 0 : i32
    %c0_i32_1 = arith.constant 0 : i32
    %c0_i32_2 = arith.constant 0 : i32
    return %arg0, %c0_i32, %c0_i32_0, %c0_i32_1 : i32, i32, i32, i32
  }
}

module attributes {stable_mosaic.version = 11 : i64} {
  func.func @_ffn_kernel(%arg0: i32, %arg1: memref<32x128xbf16, #tpu.memory_space<vmem>>, %arg2: memref<128x256xbf16, #tpu.memory_space<vmem>>, %arg3: memref<1x256xf32, #tpu.memory_space<vmem>>, %arg4: memref<256x128xbf16, #tpu.memory_space<vmem>>, %arg5: memref<1x128xf32, #tpu.memory_space<vmem>>, %arg6: memref<32x128xbf16, #tpu.memory_space<vmem>>) attributes {dimension_semantics = [#tpu.dimension_semantics<parallel>], iteration_bounds = array<i64: 1>, scalar_prefetch = 0 : i64, scratch_operands = 0 : i64, tpu.core_type = #tpu.core_type<tc>, window_params = [{transform_indices = @transform_0, window_bounds = array<i64: 32, 128>}, {pipeline_mode = #tpu.pipeline_mode<synchronous>, transform_indices = @transform_1, window_bounds = array<i64: 128, 256>}, {pipeline_mode = #tpu.pipeline_mode<synchronous>, transform_indices = @transform_2, window_bounds = array<i64: 1, 256>}, {pipeline_mode = #tpu.pipeline_mode<synchronous>, transform_indices = @transform_3, window_bounds = array<i64: 256, 128>}, {pipeline_mode = #tpu.pipeline_mode<synchronous>, transform_indices = @transform_4, window_bounds = array<i64: 1, 128>}, {transform_indices = @transform_5, window_bounds = array<i64: 32, 128>}]} {
    %c0 = arith.constant 0 : index
    %c0_0 = arith.constant 0 : index
    %0 = vector.load %arg1[%c0, %c0_0] : memref<32x128xbf16, #tpu.memory_space<vmem>>, vector<32x128xbf16>
    %c0_1 = arith.constant 0 : index
    %c0_2 = arith.constant 0 : index
    %1 = vector.load %arg2[%c0_1, %c0_2] : memref<128x256xbf16, #tpu.memory_space<vmem>>, vector<128x256xbf16>
    %cst = arith.constant dense<0.000000e+00> : vector<32x256xf32>
    %2 = tpu.matmul %0, %1, %cst {dimension_numbers = #tpu.dot_dimension_numbers<[1], [0], [0], [1], [0, 0, 1, 1], [], []>} : vector<32x128xbf16>, vector<128x256xbf16>, vector<32x256xf32> -> vector<32x256xf32>
    %c0_3 = arith.constant 0 : index
    %c0_4 = arith.constant 0 : index
    %3 = vector.load %arg3[%c0_3, %c0_4] : memref<1x256xf32, #tpu.memory_space<vmem>>, vector<1x256xf32>
    %4 = vector.broadcast %3 : vector<1x256xf32> to vector<32x256xf32>
    %5 = arith.addf %2, %4 : vector<32x256xf32>
    %cst_5 = arith.constant 0.000000e+00 : f32
    %6 = vector.broadcast %cst_5 : f32 to vector<32x256xf32>
    %7 = arith.maximumf %5, %6 : vector<32x256xf32>
    %8 = arith.truncf %7 : vector<32x256xf32> to vector<32x256xbf16>
    %c0_6 = arith.constant 0 : index
    %c0_7 = arith.constant 0 : index
    %9 = vector.load %arg4[%c0_6, %c0_7] : memref<256x128xbf16, #tpu.memory_space<vmem>>, vector<256x128xbf16>
    %cst_8 = arith.constant dense<0.000000e+00> : vector<32x128xf32>
    %10 = tpu.matmul %8, %9, %cst_8 {dimension_numbers = #tpu.dot_dimension_numbers<[1], [0], [0], [1], [0, 0, 1, 1], [], []>} : vector<32x256xbf16>, vector<256x128xbf16>, vector<32x128xf32> -> vector<32x128xf32>
    %c0_9 = arith.constant 0 : index
    %c0_10 = arith.constant 0 : index
    %11 = vector.load %arg5[%c0_9, %c0_10] : memref<1x128xf32, #tpu.memory_space<vmem>>, vector<1x128xf32>
    %12 = vector.broadcast %11 : vector<1x128xf32> to vector<32x128xf32>
    %13 = arith.addf %10, %12 : vector<32x128xf32>
    %14 = arith.truncf %13 : vector<32x128xf32> to vector<32x128xbf16>
    %c0_11 = arith.constant 0 : index
    %c0_12 = arith.constant 0 : index
    %15 = vector.load %arg6[%c0_11, %c0_12] : memref<32x128xbf16, #tpu.memory_space<vmem>>, vector<32x128xbf16>
    tpu.vector_store %arg6[%c0_11, %c0_12], %14 {strides = array<i32>} : memref<32x128xbf16, #tpu.memory_space<vmem>>, vector<32x128xbf16>,
    return
  }
  func.func @transform_0(%arg0: i32) -> (i32, i32) {
    %c0_i32 = arith.constant 0 : i32
    %c0_i32_0 = arith.constant 0 : i32
    return %arg0, %c0_i32 : i32, i32
  }
  func.func @transform_1(%arg0: i32) -> (i32, i32) {
    %c0_i32 = arith.constant 0 : i32
    %c0_i32_0 = arith.constant 0 : i32
    %c0_i32_1 = arith.constant 0 : i32
    return %c0_i32, %c0_i32_0 : i32, i32
  }
  func.func @transform_2(%arg0: i32) -> (i32, i32) {
    %c0_i32 = arith.constant 0 : i32
    %c0_i32_0 = arith.constant 0 : i32
    %c0_i32_1 = arith.constant 0 : i32
    return %c0_i32, %c0_i32_0 : i32, i32
  }
  func.func @transform_3(%arg0: i32) -> (i32, i32) {
    %c0_i32 = arith.constant 0 : i32
    %c0_i32_0 = arith.constant 0 : i32
    %c0_i32_1 = arith.constant 0 : i32
    return %c0_i32, %c0_i32_0 : i32, i32
  }
  func.func @transform_4(%arg0: i32) -> (i32, i32) {
    %c0_i32 = arith.constant 0 : i32
    %c0_i32_0 = arith.constant 0 : i32
    %c0_i32_1 = arith.constant 0 : i32
    return %c0_i32, %c0_i32_0 : i32, i32
  }
  func.func @transform_5(%arg0: i32) -> (i32, i32) {
    %c0_i32 = arith.constant 0 : i32
    %c0_i32_0 = arith.constant 0 : i32
    return %arg0, %c0_i32 : i32, i32
  }
}

module attributes {stable_mosaic.version = 11 : i64} {
  func.func @_linear_kernel(%arg0: i32, %arg1: i32, %arg2: i32, %arg3: memref<32x128xbf16, #tpu.memory_space<vmem>>, %arg4: memref<128x256xbf16, #tpu.memory_space<vmem>>, %arg5: memref<1x256xf32, #tpu.memory_space<vmem>>, %arg6: memref<32x256xbf16, #tpu.memory_space<vmem>>, %arg7: memref<32x256xf32, #tpu.memory_space<vmem>>) attributes {dimension_semantics = [#tpu.dimension_semantics<parallel>, #tpu.dimension_semantics<parallel>, #tpu.dimension_semantics<arbitrary>], iteration_bounds = array<i64: 1, 1, 1>, scalar_prefetch = 0 : i64, scratch_operands = 1 : i64, tpu.core_type = #tpu.core_type<tc>, window_params = [{transform_indices = @transform_0, window_bounds = array<i64: 32, 128>}, {transform_indices = @transform_1, window_bounds = array<i64: 128, 256>}, {transform_indices = @transform_2, window_bounds = array<i64: 1, 256>}, {transform_indices = @transform_3, window_bounds = array<i64: 32, 256>}]} {
    %c0_i32 = arith.constant 0 : i32
    %0 = arith.cmpi eq, %arg2, %c0_i32 : i32
    %1 = arith.extui %0 : i1 to i32
    %c0_i32_0 = arith.constant 0 : i32
    %2 = arith.cmpi ne, %1, %c0_i32_0 : i32
    scf.if %2 {
      %cst_10 = arith.constant 0.000000e+00 : f32
      %12 = vector.broadcast %cst_10 : f32 to vector<32x256xf32>
      %c0_11 = arith.constant 0 : index
      %c0_12 = arith.constant 0 : index
      %13 = vector.load %arg7[%c0_11, %c0_12] : memref<32x256xf32, #tpu.memory_space<vmem>>, vector<32x256xf32>
      tpu.vector_store %arg7[%c0_11, %c0_12], %12 {strides = array<i32>} : memref<32x256xf32, #tpu.memory_space<vmem>>, vector<32x256xf32>,
    } else {
    }
    %c0 = arith.constant 0 : index
    %c0_1 = arith.constant 0 : index
    %3 = vector.load %arg7[%c0, %c0_1] : memref<32x256xf32, #tpu.memory_space<vmem>>, vector<32x256xf32>
    %c0_2 = arith.constant 0 : index
    %c0_3 = arith.constant 0 : index
    %4 = vector.load %arg3[%c0_2, %c0_3] : memref<32x128xbf16, #tpu.memory_space<vmem>>, vector<32x128xbf16>
    %c0_4 = arith.constant 0 : index
    %c0_5 = arith.constant 0 : index
    %5 = vector.load %arg4[%c0_4, %c0_5] : memref<128x256xbf16, #tpu.memory_space<vmem>>, vector<128x256xbf16>
    %cst = arith.constant dense<0.000000e+00> : vector<32x256xf32>
    %6 = tpu.matmul %4, %5, %cst {dimension_numbers = #tpu.dot_dimension_numbers<[1], [0], [0], [1], [0, 0, 1, 1], [], []>} : vector<32x128xbf16>, vector<128x256xbf16>, vector<32x256xf32> -> vector<32x256xf32>
    %7 = arith.addf %3, %6 : vector<32x256xf32>
    %c0_6 = arith.constant 0 : index
    %c0_7 = arith.constant 0 : index
    %8 = vector.load %arg7[%c0_6, %c0_7] : memref<32x256xf32, #tpu.memory_space<vmem>>, vector<32x256xf32>
    tpu.vector_store %arg7[%c0_6, %c0_7], %7 {strides = array<i32>} : memref<32x256xf32, #tpu.memory_space<vmem>>, vector<32x256xf32>,
    %c0_i32_8 = arith.constant 0 : i32
    %9 = arith.cmpi eq, %arg2, %c0_i32_8 : i32
    %10 = arith.extui %9 : i1 to i32
    %c0_i32_9 = arith.constant 0 : i32
    %11 = arith.cmpi ne, %10, %c0_i32_9 : i32
    scf.if %11 {
      %c0_10 = arith.constant 0 : index
      %c0_11 = arith.constant 0 : index
      %12 = vector.load %arg7[%c0_10, %c0_11] : memref<32x256xf32, #tpu.memory_space<vmem>>, vector<32x256xf32>
      %c0_12 = arith.constant 0 : index
      %c0_13 = arith.constant 0 : index
      %13 = vector.load %arg5[%c0_12, %c0_13] : memref<1x256xf32, #tpu.memory_space<vmem>>, vector<1x256xf32>
      %14 = vector.broadcast %13 : vector<1x256xf32> to vector<32x256xf32>
      %15 = arith.addf %12, %14 : vector<32x256xf32>
      %16 = arith.truncf %15 : vector<32x256xf32> to vector<32x256xbf16>
      %c0_14 = arith.constant 0 : index
      %c0_15 = arith.constant 0 : index
      %17 = vector.load %arg6[%c0_14, %c0_15] : memref<32x256xbf16, #tpu.memory_space<vmem>>, vector<32x256xbf16>
      tpu.vector_store %arg6[%c0_14, %c0_15], %16 {strides = array<i32>} : memref<32x256xbf16, #tpu.memory_space<vmem>>, vector<32x256xbf16>,
    } else {
    }
    return
  }
  func.func @transform_0(%arg0: i32, %arg1: i32, %arg2: i32) -> (i32, i32) {
    %c0_i32 = arith.constant 0 : i32
    return %arg0, %arg2 : i32, i32
  }
  func.func @transform_1(%arg0: i32, %arg1: i32, %arg2: i32) -> (i32, i32) {
    %c0_i32 = arith.constant 0 : i32
    return %arg2, %arg1 : i32, i32
  }
  func.func @transform_2(%arg0: i32, %arg1: i32, %arg2: i32) -> (i32, i32) {
    %c0_i32 = arith.constant 0 : i32
    %c0_i32_0 = arith.constant 0 : i32
    return %c0_i32, %arg1 : i32, i32
  }
  func.func @transform_3(%arg0: i32, %arg1: i32, %arg2: i32) -> (i32, i32) {
    %c0_i32 = arith.constant 0 : i32
    return %arg0, %arg1 : i32, i32
  }
}

module attributes {stable_mosaic.version = 11 : i64} {
  func.func @_linear_kernel(%arg0: i32, %arg1: i32, %arg2: i32, %arg3: memref<32x128xbf16, #tpu.memory_space<vmem>>, %arg4: memref<128x128xbf16, #tpu.memory_space<vmem>>, %arg5: memref<1x128xf32, #tpu.memory_space<vmem>>, %arg6: memref<32x128xf32, #tpu.memory_space<vmem>>, %arg7: memref<32x128xf32, #tpu.memory_space<vmem>>) attributes {dimension_semantics = [#tpu.dimension_semantics<parallel>, #tpu.dimension_semantics<parallel>, #tpu.dimension_semantics<arbitrary>], iteration_bounds = array<i64: 1, 1, 1>, scalar_prefetch = 0 : i64, scratch_operands = 1 : i64, tpu.core_type = #tpu.core_type<tc>, window_params = [{transform_indices = @transform_0, window_bounds = array<i64: 32, 128>}, {transform_indices = @transform_1, window_bounds = array<i64: 128, 128>}, {transform_indices = @transform_2, window_bounds = array<i64: 1, 128>}, {transform_indices = @transform_3, window_bounds = array<i64: 32, 128>}]} {
    %c0_i32 = arith.constant 0 : i32
    %0 = arith.cmpi eq, %arg2, %c0_i32 : i32
    %1 = arith.extui %0 : i1 to i32
    %c0_i32_0 = arith.constant 0 : i32
    %2 = arith.cmpi ne, %1, %c0_i32_0 : i32
    scf.if %2 {
      %cst_10 = arith.constant 0.000000e+00 : f32
      %12 = vector.broadcast %cst_10 : f32 to vector<32x128xf32>
      %c0_11 = arith.constant 0 : index
      %c0_12 = arith.constant 0 : index
      %13 = vector.load %arg7[%c0_11, %c0_12] : memref<32x128xf32, #tpu.memory_space<vmem>>, vector<32x128xf32>
      tpu.vector_store %arg7[%c0_11, %c0_12], %12 {strides = array<i32>} : memref<32x128xf32, #tpu.memory_space<vmem>>, vector<32x128xf32>,
    } else {
    }
    %c0 = arith.constant 0 : index
    %c0_1 = arith.constant 0 : index
    %3 = vector.load %arg7[%c0, %c0_1] : memref<32x128xf32, #tpu.memory_space<vmem>>, vector<32x128xf32>
    %c0_2 = arith.constant 0 : index
    %c0_3 = arith.constant 0 : index
    %4 = vector.load %arg3[%c0_2, %c0_3] : memref<32x128xbf16, #tpu.memory_space<vmem>>, vector<32x128xbf16>
    %c0_4 = arith.constant 0 : index
    %c0_5 = arith.constant 0 : index
    %5 = vector.load %arg4[%c0_4, %c0_5] : memref<128x128xbf16, #tpu.memory_space<vmem>>, vector<128x128xbf16>
    %cst = arith.constant dense<0.000000e+00> : vector<32x128xf32>
    %6 = tpu.matmul %4, %5, %cst {dimension_numbers = #tpu.dot_dimension_numbers<[1], [0], [0], [1], [0, 0, 1, 1], [], []>} : vector<32x128xbf16>, vector<128x128xbf16>, vector<32x128xf32> -> vector<32x128xf32>
    %7 = arith.addf %3, %6 : vector<32x128xf32>
    %c0_6 = arith.constant 0 : index
    %c0_7 = arith.constant 0 : index
    %8 = vector.load %arg7[%c0_6, %c0_7] : memref<32x128xf32, #tpu.memory_space<vmem>>, vector<32x128xf32>
    tpu.vector_store %arg7[%c0_6, %c0_7], %7 {strides = array<i32>} : memref<32x128xf32, #tpu.memory_space<vmem>>, vector<32x128xf32>,
    %c0_i32_8 = arith.constant 0 : i32
    %9 = arith.cmpi eq, %arg2, %c0_i32_8 : i32
    %10 = arith.extui %9 : i1 to i32
    %c0_i32_9 = arith.constant 0 : i32
    %11 = arith.cmpi ne, %10, %c0_i32_9 : i32
    scf.if %11 {
      %c0_10 = arith.constant 0 : index
      %c0_11 = arith.constant 0 : index
      %12 = vector.load %arg7[%c0_10, %c0_11] : memref<32x128xf32, #tpu.memory_space<vmem>>, vector<32x128xf32>
      %c0_12 = arith.constant 0 : index
      %c0_13 = arith.constant 0 : index
      %13 = vector.load %arg5[%c0_12, %c0_13] : memref<1x128xf32, #tpu.memory_space<vmem>>, vector<1x128xf32>
      %14 = vector.broadcast %13 : vector<1x128xf32> to vector<32x128xf32>
      %15 = arith.addf %12, %14 : vector<32x128xf32>
      %c0_14 = arith.constant 0 : index
      %c0_15 = arith.constant 0 : index
      %16 = vector.load %arg6[%c0_14, %c0_15] : memref<32x128xf32, #tpu.memory_space<vmem>>, vector<32x128xf32>
      tpu.vector_store %arg6[%c0_14, %c0_15], %15 {strides = array<i32>} : memref<32x128xf32, #tpu.memory_space<vmem>>, vector<32x128xf32>,
    } else {
    }
    return
  }
  func.func @transform_0(%arg0: i32, %arg1: i32, %arg2: i32) -> (i32, i32) {
    %c0_i32 = arith.constant 0 : i32
    return %arg0, %arg2 : i32, i32
  }
  func.func @transform_1(%arg0: i32, %arg1: i32, %arg2: i32) -> (i32, i32) {
    %c0_i32 = arith.constant 0 : i32
    return %arg2, %arg1 : i32, i32
  }
  func.func @transform_2(%arg0: i32, %arg1: i32, %arg2: i32) -> (i32, i32) {
    %c0_i32 = arith.constant 0 : i32
    %c0_i32_0 = arith.constant 0 : i32
    return %c0_i32, %arg1 : i32, i32
  }
  func.func @transform_3(%arg0: i32, %arg1: i32, %arg2: i32) -> (i32, i32) {
    %c0_i32 = arith.constant 0 : i32
    return %arg0, %arg1 : i32, i32
  }
}

</mosaic_0001>

<bundles_post_ra>
// kernel: transformer_forward.47
= control target key start
LH: loop header
LB: loop body
LE: loop exit
PB: predicated region body
PF: predicated region fallthrough
CT: control target
= control target key end

     0   :  { %s875_s12 = smov 0   ;;  %s877_s13 = smov 0   ;;  %s980_s0 = inlined_call_operand.vmem [shape: bf16[32,128], index: 0, kind: input, shape index: {}]   ;;  %s981_s1 = inlined_call_operand.vmem [shape: bf16[128,384], index: 1, kind: input, shape index: {}]   ;;  %s982_s2 = inlined_call_operand.vmem [shape: f32[1,384], index: 2, kind: input, shape index: {}]   ;;  %s983_s3 = inlined_call_operand.vmem [shape: bf16[32,384], index: 3, kind: output, shape index: {}]  }
   0x1   :  { %s879_s14 = smov 0   ;;  %s881_s15 = smov 0  }
   0x2   :  { %s883_s16 = smov 0  }
   0x3 LB: > { %s28_s17 = sadd.s32 1, %s849_s15  ;;  %s691_s18 = sadd.s32 4294967295, %s853_s16   ;;  %s853_s16 = sphi %s883_s16, %s13_s16   ;;  %s849_s15 = sphi %s881_s15, %s988_s15   ;;  %s845_s14 = sphi %s879_s14, %s987_s14   ;;  %s841_s13 = sphi %s877_s13, %s986_s13   ;;  %s837_s12 = sphi %s875_s12, %s985_s12  }
   0x4   : > { %p30_p0 = scmp.ge.s32.totalorder %s28_s17, 3  ;;  %p76_p1 = scmp.ne.s32.totalorder %s841_s13, %s837_s12 }
   0x5   : > { %p77_p2 = scmp.eq.s32.totalorder %s853_s16, 0  ;;  %p134_p4 = scmp.eq.s32.totalorder %s691_s18, 2 }
   0x6   : > { %s990_s17 = smov (%p30_p0, %s28_s17), 0  ;;  %s69_s20 = sadd.s32 1, %s841_s13 }
   0x7   : > { %p78_p3 = por %p77_p2, %p76_p1  ;;  %s65_s19 = ssub.s32 %s849_s15, %s990_s17 }
   0x8   : > { %p67_p5 = scmp.eq.s32.totalorder %s65_s19, 0  ;;  %p910_p6 = por %p134_p4, %p76_p1 }
   0x9   : > { %p695_p7 = scmp.ge.s32.totalorder %s853_s16, 3 }
   0xa   : > { %s915_s22 = scalar_select %p67_p5, %s841_s13, %s69_s20  }
   0xb   : > { %168 = sbr.rel (%p695_p7) target bundleno = 32 (0x20), region = 20 }
  0x12   : > { %171 = sbr.rel (!%p78_p3) target bundleno = 32 (0x20), region = 24  ;;  %s173_s23 = sand.u32 (%p78_p3), 1, %s841_s13  }
  0x13   : > { %s697_s24 = sshll.u32 (%p78_p3), %s849_s15, 2  ;;  %s696_s25 = sshll.u32 (%p78_p3), %s173_s23, 6 }
  0x14   : > { %s923_s28 = scalar_lea.vmem (%p78_p3), %s981_s1, %s697_s24  ;;  %s175_s29 = scalar_lea.vmem (%p78_p3), [#allocation3], %s696_s25 }
  0x15   : > { %v196_v0 = vld [vmem:[%s923_s28] sm:$0xf] (%p78_p3)  ;;  %v198_v1 = vld [vmem:[%s923_s28 + $0xc] sm:$0xf] (%p78_p3)  ;;  %v200_v2 = vld [vmem:[%s923_s28 + $0x18] sm:$0xf] (%p78_p3) }
  0x16   : > { %197 = vst [vmem:[%s175_s29] sm:$0xf] (%p78_p3), %v196_v0  ;;  %199 = vst [vmem:[%s175_s29 + $0x4] sm:$0xf] (%p78_p3), %v198_v1  ;;  %v202_v3 = vld [vmem:[%s923_s28 + $0x24] sm:$0xf] (%p78_p3) }
  0x17   : > { %v204_v4 = vld [vmem:[%s923_s28 + $0x30] sm:$0xf] (%p78_p3)  ;;  %201 = vst [vmem:[%s175_s29 + $0x8] sm:$0xf] (%p78_p3), %v200_v2  ;;  %203 = vst [vmem:[%s175_s29 + $0xc] sm:$0xf] (%p78_p3), %v202_v3 }
  0x18   : > { %205 = vst [vmem:[%s175_s29 + $0x10] sm:$0xf] (%p78_p3), %v204_v4  ;;  %v206_v5 = vld [vmem:[%s923_s28 + $0x3c] sm:$0xf] (%p78_p3)  ;;  %v208_v6 = vld [vmem:[%s923_s28 + $0x48] sm:$0xf] (%p78_p3) }
  0x19   : > { %v210_v7 = vld [vmem:[%s923_s28 + $0x54] sm:$0xf]  ;;  %207 = vst [vmem:[%s175_s29 + $0x14] sm:$0xf] %v206_v5  ;;  %209 = vst [vmem:[%s175_s29 + $0x18] sm:$0xf] %v208_v6 }
  0x1a   : > { %211 = vst [vmem:[%s175_s29 + $0x1c] sm:$0xf] %v210_v7  ;;  %v212_v8 = vld [vmem:[%s923_s28 + $0x60] sm:$0xf]  ;;  %v214_v9 = vld [vmem:[%s923_s28 + $0x6c] sm:$0xf] }
  0x1b   : > { %v216_v10 = vld [vmem:[%s923_s28 + $0x78] sm:$0xf]  ;;  %213 = vst [vmem:[%s175_s29 + $0x20] sm:$0xf] %v212_v8  ;;  %215 = vst [vmem:[%s175_s29 + $0x24] sm:$0xf] %v214_v9 }
  0x1c   : > { %217 = vst [vmem:[%s175_s29 + $0x28] sm:$0xf] %v216_v10  ;;  %v218_v11 = vld [vmem:[%s923_s28 + $0x84] sm:$0xf]  ;;  %v220_v12 = vld [vmem:[%s923_s28 + $0x90] sm:$0xf] }
  0x1d   : > { %v222_v13 = vld [vmem:[%s923_s28 + $0x9c] sm:$0xf]  ;;  %219 = vst [vmem:[%s175_s29 + $0x2c] sm:$0xf] %v218_v11  ;;  %221 = vst [vmem:[%s175_s29 + $0x30] sm:$0xf] %v220_v12 }
  0x1e   : > { %223 = vst [vmem:[%s175_s29 + $0x34] sm:$0xf] %v222_v13  ;;  %v224_v14 = vld [vmem:[%s923_s28 + $0xa8] sm:$0xf]  ;;  %v226_v15 = vld [vmem:[%s923_s28 + $0xb4] sm:$0xf] }
  0x1f   : > { %225 = vst [vmem:[%s175_s29 + $0x38] sm:$0xf] %v224_v14  ;;  %227 = vst [vmem:[%s175_s29 + $0x3c] sm:$0xf] %v226_v15 }
  0x20 PF: > { %p698_p8 = scmp.ge.s32.totalorder %s853_s16, 1  ;;  %p287_p9 = scmp.lt.s32.totalorder %s853_s16, 4 }
  0x22   : > { %p288_p10 = pnand %p698_p8, %p287_p9 }
  0x23   : > { %s294_s30 = sand.u32 (!%p288_p10), 1, %s837_s12   ;;  %v813_v16 = vld [vmem:[%s980_s0] sm:$0xff] (!%p288_p10)   ;;  %v814_v25 = vld [vmem:[%s980_s0 + $0x8] sm:$0xff] (!%p288_p10)   ;;  %p337_p11 = scmp.lt.s32.totalorder (!%p288_p10), %s845_s14, 2 }
  0x24   : > { %291 = sbr.rel (%p288_p10) target bundleno = 300 (0x12c), region = 69  ;;  %s699_s6 = sshll.u32 (!%p288_p10), %s294_s30, 6  ;;  %761 = vmatprep.mubr.bf16.mxu0 (!%p288_p10), %v813_v16 }
  0x25   : > { %s296_s7 = scalar_lea.vmem (!%p288_p10), [#allocation3], %s699_s6  ;;  %s700_s20 = sshll.u32 (!%p288_p10), %s294_s30, 4 }
  0x26   : > { %v805_v17 = vld [vmem:[%s296_s7] sm:$0xff] (!%p288_p10)   ;;  %v806_v18 = vld [vmem:[%s296_s7 + $0x8] sm:$0xff] (!%p288_p10)   ;;  %v807_v19 = vld [vmem:[%s296_s7 + $0x10] sm:$0xff] (!%p288_p10)   ;;  %s326_s23 = scalar_lea.vmem (!%p288_p10), [#allocation4], %s700_s20 }
  0x27   : > { %745 = vmatprep.subr.bf16.mxu0 (!%p288_p10), %v805_v17  ;;  %v808_v20 = vld [vmem:[%s296_s7 + $0x18] sm:$0xff] (!%p288_p10)   ;;  %v809_v21 = vld [vmem:[%s296_s7 + $0x20] sm:$0xff] (!%p288_p10)   ;;  %v810_v22 = vld [vmem:[%s296_s7 + $0x28] sm:$0xff] (!%p288_p10)  }
  0x28   : > { %746 = vmatpush3.bf16.msra.mxu0 (!%p288_p10), %v805_v17  ;;  %v811_v23 = vld [vmem:[%s296_s7 + $0x30] sm:$0xff] (!%p288_p10)   ;;  %v812_v24 = vld [vmem:[%s296_s7 + $0x38] sm:$0xff] (!%p288_p10)  }
  0x29   : > { %747 = vmatprep.subr.bf16.mxu0 (!%p288_p10), %v806_v18 }
  0x2b   : > { %s338_s10 = scalar_select %p337_p11, %s845_s14, 2 }
  0x2c   : > { %748 = vmatpush3.bf16.msra.mxu0 %v806_v18  ;;  %s717_s24 = sshll.u32 (%p910_p6), %s845_s14, 2 }
  0x2d   : > { %749 = vmatprep.subr.bf16.mxu0 %v807_v19  ;;  %s339_s19 = scalar_lea.vmem %s982_s2, %s338_s10  ;;  %s540_s26 = scalar_lea.vmem (%p910_p6), %s983_s3, %s717_s24 }
  0x2e   : > { %v711_v27 = vld [vmem:[%s339_s19] ss:$0 sm:$0xff] }
  0x30   : > { %750 = vmatpush3.bf16.msra.mxu0 %v807_v19 }
  0x31   : > { %751 = vmatprep.subr.bf16.mxu0 %v808_v20 }
  0x34   : > { %752 = vmatpush3.bf16.msra.mxu0 %v808_v20 }
  0x35   : > { %753 = vmatprep.subr.bf16.mxu0 %v809_v21 }
  0x38   : > { %754 = vmatpush3.bf16.msra.mxu0 %v809_v21 }
  0x39   : > { %755 = vmatprep.subr.bf16.mxu0 %v810_v22 }
  0x3c   : > { %756 = vmatpush3.bf16.msra.mxu0 %v810_v22 }
  0x3d   : > { %757 = vmatprep.subr.bf16.mxu0 %v811_v23 }
  0x40   : > { %758 = vmatpush3.bf16.msra.mxu0 %v811_v23 }
  0x41   : > { %759 = vmatprep.subr.bf16.mxu0 %v812_v24 }
  0x44   : > { %760 = vmatpush3.bf16.msra.mxu0 %v812_v24 }
  0x47   : > { %762 = vmatmul.mubr.bf16.vlgmr.msra.gmra.mrb[0].mxu0 %v814_v25 }
 0x11a   : > { %v763_v26 = vpop.f32.mrb[0].mxu0 }
 0x11b   : > { %v468_v28 = vpop.f32.mrb[1].mxu0  ;;  %v507_v30 = vadd.f32 %v763_v26, %v711_v27 }
 0x11c   : > { %v764_v29 = vpop.f32.mrb[2].mxu0  ;;  %v505_v33 = vadd.f32 %v711_v27, %v468_v28  ;;  %535 = sbr.rel (!%p910_p6) target bundleno = 300 (0x12c), region = 85 }
 0x11d   : > { %v508_v31 = vadd.f32 %v764_v29, %v711_v27  ;;  %v471_v32 = vpop.f32.mrb[3].mxu0 }
 0x11e   : > { %v506_v34 = vadd.f32 %v711_v27, %v471_v32 }
 0x11f   : > { %v732_v35 = vpack.c.bf16 %v508_v31, %v507_v30 }
 0x120   : > { %v727_v36 = vpack.c.bf16 %v506_v34, %v505_v33 }
 0x121   : > { %734 = vst [vmem:[%s326_s23 + $0x8] sm:$0xff] %v732_v35  }
 0x122   : > { %728 = vst [vmem:[%s326_s23] sm:$0xff] %v727_v36  }
 0x128   : > { %v560_v39 = vld [vmem:[%s326_s23 + $0x8] sm:$0xf]  ;;  %v562_v40 = vld [vmem:[%s326_s23 + $0xc] sm:$0xf] }
 0x129   : > { %v556_v37 = vld [vmem:[%s326_s23] sm:$0xf]  ;;  %v558_v38 = vld [vmem:[%s326_s23 + $0x4] sm:$0xf]  ;;  %561 = vst [vmem:[%s540_s26 + $0x18] sm:$0xf] %v560_v39 }
 0x12a   : > { %557 = vst [vmem:[%s540_s26] sm:$0xf] %v556_v37  ;;  %559 = vst [vmem:[%s540_s26 + $0xc] sm:$0xf] %v558_v38 }
 0x12b   : > { %563 = vst [vmem:[%s540_s26 + $0x24] sm:$0xf] %v562_v40 }
 0x12c PF: > { %s13_s16 = sadd.s32 1, %s853_s16   ;;  %s985_s12 = smov %s841_s13 }
 0x12d   : > { %p10_p12 = scmp.ge.s32.totalorder %s13_s16, 5   ;;  %s986_s13 = smov %s915_s22 }
 0x12e   : > { %s987_s14 = smov %s849_s15  ;;  %s988_s15 = smov %s990_s17 }
 0x12f   :  { %12 = sbr.rel (!%p10_p12) target bundleno = 3 (0x3), region = 163 }

// kernel: transformer_forward.48
= control target key start
LH: loop header
LB: loop body
LE: loop exit
PB: predicated region body
PF: predicated region fallthrough
CT: control target
= control target key end

     0   :  { %s1172_s15 = smov 0   ;;  %s1308_s0 = inlined_call_operand.vmem [shape: bf16[2,4,16,32], index: 0, kind: input, shape index: {}]   ;;  %s1309_s1 = inlined_call_operand.vmem [shape: bf16[2,4,16,32], index: 1, kind: input, shape index: {}]   ;;  %s1310_s2 = inlined_call_operand.vmem [shape: bf16[2,4,16,32], index: 2, kind: input, shape index: {}]   ;;  %s1311_s3 = inlined_call_operand.vmem [shape: s32[2,1,16], index: 3, kind: input, shape index: {}]   ;;  %s1312_s4 = inlined_call_operand.vmem [shape: bf16[2,4,16,32], index: 4, kind: output, shape index: {}]  }
   0x1 LB: > { %s966_s16 = sadd.s32 4294967295, %s1142_s15   ;;  %p970_p0 = scmp.ge.s32.totalorder %s1142_s15, 1  ;;  %s1142_s15 = sphi %s1172_s15, %s14_s15  }
   0x2   : > { %p190_p1 = scmp.lt.s32.totalorder %s1142_s15, 3 }
   0x4   : > { %p191_p2 = pnand %p970_p0, %p190_p1 }
   0x5   : > { %p229_p3 = scmp.lt.s32.totalorder (!%p191_p2), %s966_s16, 1  ;;  %v1144_v0 = vmov (!%p191_p2), 0.0   ;;  %vm1145_vm0 = vmmov (!%p191_p2), 0   ;;  %vm297_vm1 = vcmask (!%p191_p2), 261120   ;;  %v517_v29 = vlaneseq (!%p191_p2) }
   0x6   : > { %194 = sbr.rel (%p191_p2) target bundleno = 787 (0x313), region = 36  ;;  %1037 = vmatprep.subr.bf16.mxu0 (!%p191_p2), %v1144_v0  ;;  %1043 = vmatprep.subr.bf16.mxu1 (!%p191_p2), %v1144_v0  ;;  %v1146_v33 = vmov (!%p191_p2), 0   ;;  %vm544_vm7 = vcmask (!%p191_p2), 130048   ;;  %vm869_vm9 = vcmask (!%p191_p2), 257024  }
   0x7   : > { %1039 = vmatprep.mubr.msk.bf16.mxu0 (!%p191_p2), %vm1145_vm0, %v1144_v0  ;;  %1045 = vmatprep.mubr.msk.bf16.mxu1 (!%p191_p2), %vm1145_vm0, %v1144_v0  ;;  %v518_v31 = vshrl.u32 (!%p191_p2), %v517_v29, 7  ;;  %v521_v35 = vand.u32 (!%p191_p2), 127, %v517_v29 }
   0x9   : > { %v527_v32 = vsub.s32 (!%p191_p2), 0, %v518_v31  ;;  %v519_v37 = vadd.s32 (!%p191_p2), 8, %v518_v31  ;;  %vm522_vm3 = vcmp.le.s32.totalorder (!%p191_p2), %v521_v35, %v518_v31 }
   0xb   : > { %vm523_vm5 = vcmp.le.s32.totalorder (!%p191_p2), %v521_v35, %v519_v37 }
   0xd   : > { %s1318_s16 = smov (!%p229_p3, %s966_s16), 1 }
   0xe   : > { %s1189_s17 = sshll.u32 %s1318_s16, 5  ;;  %s246_s26 = scalar_lea.vmem %s1311_s3, %s1318_s16 }
   0xf   : > { %s238_s20 = scalar_lea.vmem %s1309_s1, %s1189_s17  ;;  %s233_s23 = scalar_lea.vmem %s1308_s0, %s1189_s17  ;;  %v278_v30 = vld [vmem:[%s246_s26] sm:$0x1] }
  0x10   : > { %v1096_v1 = vld [vmem:[%s238_s20] sm:$0xff]   ;;  %v1097_v2 = vld [vmem:[%s238_s20 + $0x8] sm:$0xff]   ;;  %v1098_v6 = vld [vmem:[%s238_s20 + $0x10] sm:$0xff]   ;;  %vm516_vm2 = vcmp.ne.s32.totalorder %v278_v30, 0  ;;  %s1267_s29 = scalar_lea.vmem %s1310_s2, %s1189_s17  ;;  %s1287_s6 = scalar_lea.vmem %s1312_s4, %s1189_s17 }
  0x11   : > { %v302_v3 = vsel %vm297_vm1, %v1096_v1, 0  ;;  %v254_v4 = vld [vmem:[%s233_s23] sm:$0xf]  ;;  %v255_v5 = vld [vmem:[%s233_s23 + $0x4] sm:$0xf]  ;;  %v359_v7 = vsel %vm297_vm1, %v1097_v2, 0 }
  0x12   : > { %1038 = vmatpush3.bf16.xpose.msra.mxu0 %v302_v3  ;;  %v279_v8 = vmul.bf16 1043676725, %v254_v4  ;;  %v280_v9 = vmul.bf16 1043676725, %v255_v5  ;;  %v1099_v10 = vld [vmem:[%s238_s20 + $0x18] sm:$0xff]   ;;  %1044 = vmatpush3.bf16.xpose.msra.mxu1 %v359_v7  ;;  %v416_v19 = vsel %vm297_vm1, %v1098_v6, 0 }
  0x13   : > { %v256_v11 = vld [vmem:[%s233_s23 + $0x8] sm:$0xf]  ;;  %v257_v12 = vld [vmem:[%s233_s23 + $0xc] sm:$0xf]  ;;  %1049 = vmatprep.subr.bf16.mxu0 %v1144_v0  ;;  %1055 = vmatprep.subr.bf16.mxu1 %v1144_v0  ;;  %v258_v17 = vld [vmem:[%s233_s23 + $0x10] sm:$0xf] }
  0x14   : > { %v281_v13 = vmul.bf16 1043676725, %v256_v11  ;;  %v282_v14 = vmul.bf16 1043676725, %v257_v12  ;;  %v979_v15 = vcombine.low %v279_v8, %v280_v9  ;;  %v259_v18 = vld [vmem:[%s233_s23 + $0x14] sm:$0xf] }
  0x15   : > { %v260_v20 = vld [vmem:[%s233_s23 + $0x18] sm:$0xf]  ;;  %v261_v21 = vld [vmem:[%s233_s23 + $0x1c] sm:$0xf]  ;;  %v473_v22 = vsel %vm297_vm1, %v1099_v10, 0  ;;  %v524_v34 = vsel %vm516_vm2, 1, %v1146_v33 }
  0x16   : > { %v982_v16 = vcombine.low %v281_v13, %v282_v14  ;;  %v283_v23 = vmul.bf16 1043676725, %v258_v17  ;;  %v284_v24 = vmul.bf16 1043676725, %v259_v18  ;;  %v285_v25 = vmul.bf16 1043676725, %v260_v20 }
  0x17   : > { %v286_v26 = vmul.bf16 1043676725, %v261_v21  ;;  %v528_v36 = vrot.slane %v524_v34, %v527_v32 }
  0x18   : > { %v985_v27 = vcombine.low %v283_v23, %v284_v24 }
  0x19   : > { %1040 = vmatmul.mubr.msk.bf16.vlgmr.msra.gmra.mrb[0].mxu0 %vm297_vm1, %v979_v15  ;;  %1046 = vmatmul.mubr.msk.bf16.vlgmr.msra.gmra.mrb[0].mxu1 %vm297_vm1, %v982_v16  ;;  %v988_v28 = vcombine.low %v285_v25, %v286_v26  ;;  %vm529_vm4 = vcmp.eq.s32.totalorder %v528_v36, 1 }
  0x1a   : > { %1050 = vmatpush3.bf16.xpose.msra.mxu0 %v416_v19  ;;  %1056 = vmatpush3.bf16.xpose.msra.mxu1 %v473_v22  ;;  %vm1223_vm6 = vmand %vm529_vm4, %vm522_vm3 }
  0x1b   : > { %1051 = vmatprep.mubr.msk.bf16.mxu0 %vm1145_vm0, %v1144_v0  ;;  %1057 = vmatprep.mubr.msk.bf16.mxu1 %vm1145_vm0, %v1144_v0  ;;  %vm1227_vm8 = vmand %vm529_vm4, %vm523_vm5 }
  0x1c   : > { %1061 = vmatprep.subr.bf16.mxu0 %v1144_v0  ;;  %1067 = vmatprep.subr.bf16.mxu1 %v1144_v0 }
  0x21   : > { %1052 = vmatmul.mubr.msk.bf16.vlgmr.msra.gmra.mrb[4].mxu0 %vm297_vm1, %v985_v27  ;;  %1058 = vmatmul.mubr.msk.bf16.vlgmr.msra.gmra.mrb[4].mxu1 %vm297_vm1, %v988_v28 }
  0x22   : > { %1063 = vmatprep.mubr.msk.bf16.mxu0 %vm1145_vm0, %v1144_v0  ;;  %1069 = vmatprep.mubr.msk.bf16.mxu1 %vm1145_vm0, %v1144_v0 }
  0xec   : > { %v338_v39 = vpop.f32.mrb[0].mxu0  ;;  %v395_v42 = vpop.f32.mrb[0].mxu1 }
  0xed   : > { %v536_v41 = vsel %vm1223_vm6, %v338_v39, -1e+09  ;;  %v1041_v43 = vpop.f32.mrb[1].mxu0  ;;  %v538_v44 = vsel %vm1223_vm6, %v395_v42, -1e+09  ;;  %v1047_v46 = vpop.f32.mrb[1].mxu1 }
  0xee   : > { %v341_v45 = vpop.f32.mrb[2].mxu0  ;;  %v545_v47 = vsel %vm544_vm7, %v536_v41, -inf  ;;  %v551_v49 = vsel %vm544_vm7, %v538_v44, -inf  ;;  %v398_v50 = vpop.f32.mrb[2].mxu1 }
  0xef   : > { %v537_v48 = vsel %vm1227_vm8, %v341_v45, -1e+09  ;;  %546 = vmax.xlane.f32.xlu0 %v545_v47  ;;  %v1042_v51 = vpop.f32.mrb[3].mxu0  ;;  %552 = vmax.xlane.f32.xlu1 %v551_v49  ;;  %v539_v52 = vsel %vm1227_vm8, %v398_v50, -1e+09  ;;  %v1048_v53 = vpop.f32.mrb[3].mxu1 }
  0xf0   : > { %v554_v54 = vsel %vm544_vm7, %v539_v52, -inf  ;;  %v548_v55 = vsel %vm544_vm7, %v537_v48, -inf  ;;  %v1100_v49 = vld [vmem:[%s1267_s29] sm:$0xff]   ;;  %v1101_v50 = vld [vmem:[%s1267_s29 + $0x8] sm:$0xff]  }
  0xf1   : > { %1062 = vmatpush3.bf16.msra.mxu0 %v1100_v49  ;;  %1068 = vmatpush3.bf16.msra.mxu1 %v1101_v50 }
  0xf2   : > { %1073 = vmatprep.subr.bf16.mxu0 %v1144_v0  ;;  %1079 = vmatprep.subr.bf16.mxu1 %v1144_v0 }
  0xf3   : > { %549 = vmax.xlane.f32.xlu0 %v548_v55  ;;  %555 = vmax.xlane.f32.xlu1 %v554_v54 }
  0xf4   : > { %v452_v56 = vpop.f32.mrb[4].mxu0  ;;  %v509_v59 = vpop.f32.mrb[4].mxu1 }
  0xf5   : > { %v540_v57 = vsel %vm1223_vm6, %v452_v56, -1e+09  ;;  %v1053_v58 = vpop.f32.mrb[5].mxu0  ;;  %v542_v61 = vsel %vm1223_vm6, %v509_v59, -1e+09  ;;  %v1059_v63 = vpop.f32.mrb[5].mxu1 }
  0xf6   : > { %v455_v60 = vpop.f32.mrb[6].mxu0  ;;  %v557_v62 = vsel %vm544_vm7, %v540_v57, -inf  ;;  %v512_v3 = vpop.f32.mrb[6].mxu1  ;;  %v563_v7 = vsel %vm544_vm7, %v542_v61, -inf }
  0xf7   : > { %v541_v1 = vsel %vm1227_vm8, %v455_v60, -1e+09  ;;  %558 = vmax.xlane.f32.xlu0 %v557_v62  ;;  %v1054_v2 = vpop.f32.mrb[7].mxu0  ;;  %v543_v4 = vsel %vm1227_vm8, %v512_v3, -1e+09  ;;  %v1060_v6 = vpop.f32.mrb[7].mxu1 }
  0xf8   : > { %v560_v5 = vsel %vm544_vm7, %v541_v1, -inf  ;;  %v566_v8 = vsel %vm544_vm7, %v543_v4, -inf }
  0xf9   : > { %561 = vmax.xlane.f32.xlu1 %v560_v5 }
  0xfb   : > { %564 = vmax.xlane.f32.xlu0 %v563_v7  ;;  %v1103_v7 = vld [vmem:[%s1267_s29 + $0x18] sm:$0xff]  }
  0xfd   : > { %567 = vmax.xlane.f32.xlu1 %v566_v8 }
 0x17c   : > { %v547_v9 = vpop.xlane.xlu0 %546  ;;  %v553_v10 = vpop.xlane.xlu1 %552 }
 0x17d   : > { %v569_v11 = vsub.f32 %v536_v41, %v547_v9  ;;  %v571_v12 = vsub.f32 %v538_v44, %v553_v10 }
 0x17f   : > { %v577_v13 = vmul.f32 1.442695, %v569_v11  ;;  %v581_v14 = vmul.f32 1.442695, %v571_v12 }
 0x180   : > { %v550_v15 = vpop.xlane.xlu0 %549  ;;  %v556_v16 = vpop.xlane.xlu1 %555 }
 0x181   : > { %1104 = vpow2.f32 %v577_v13  ;;  %v570_v17 = vsub.f32 %v537_v48, %v550_v15  ;;  %v572_v18 = vsub.f32 %v539_v52, %v556_v16 }
 0x182   : > { %1106 = vpow2.f32 %v581_v14 }
 0x183   : > { %v579_v19 = vmul.f32 1.442695, %v570_v17  ;;  %v583_v20 = vmul.f32 1.442695, %v572_v18 }
 0x184   : > { %v559_v21 = vpop.xlane.xlu0 %558 }
 0x185   : > { %1108 = vpow2.f32 %v579_v19  ;;  %v573_v22 = vsub.f32 %v540_v57, %v559_v21 }
 0x186   : > { %v562_v23 = vpop.xlane.xlu1 %561  ;;  %1110 = vpow2.f32 %v583_v20 }
 0x187   : > { %v585_v24 = vmul.f32 1.442695, %v573_v22  ;;  %v574_v25 = vsub.f32 %v541_v1, %v562_v23  ;;  %v1102_v1 = vld [vmem:[%s1267_s29 + $0x10] sm:$0xff]  }
 0x188   : > { %v565_v26 = vpop.xlane.xlu0 %564 }
 0x189   : > { %1112 = vpow2.f32 %v585_v24  ;;  %v587_v27 = vmul.f32 1.442695, %v574_v25  ;;  %v575_v28 = vsub.f32 %v542_v61, %v565_v26 }
 0x18a   : > { %v568_v29 = vpop.xlane.xlu1 %567 }
 0x18b   : > { %v1105_v30 = vpop.eup %1104  ;;  %1114 = vpow2.f32 %v587_v27  ;;  %v589_v31 = vmul.f32 1.442695, %v575_v28  ;;  %v576_v32 = vsub.f32 %v543_v4, %v568_v29 }
 0x18c   : > { %v593_v33 = vsel %vm544_vm7, %v1105_v30, 0.0  ;;  %v1107_v34 = vpop.eup %1106 }
 0x18d   : > { %1116 = vpow2.f32 %v589_v31  ;;  %v591_v35 = vmul.f32 1.442695, %v576_v32  ;;  %594 = vadd.xlane.f32.xlu0 %v593_v33  ;;  %v599_v37 = vsel %vm544_vm7, %v1107_v34, 0.0 }
 0x18f   : > { %v1109_v36 = vpop.eup %1108  ;;  %1118 = vpow2.f32 %v591_v35 }
 0x190   : > { %v596_v38 = vsel %vm544_vm7, %v1109_v36, 0.0  ;;  %v1111_v39 = vpop.eup %1110 }
 0x191   : > { %600 = vadd.xlane.f32.xlu0 %v599_v37  ;;  %597 = vadd.xlane.f32.xlu1 %v596_v38  ;;  %v602_v42 = vsel %vm544_vm7, %v1111_v39, 0.0 }
 0x193   : > { %v1113_v40 = vpop.eup %1112 }
 0x194   : > { %v605_v41 = vsel %vm544_vm7, %v1113_v40, 0.0 }
 0x195   : > { %v1115_v43 = vpop.eup %1114  ;;  %606 = vadd.xlane.f32.xlu0 %v605_v41  ;;  %603 = vadd.xlane.f32.xlu1 %v602_v42 }
 0x196   : > { %v608_v46 = vsel %vm544_vm7, %v1115_v43, 0.0 }
 0x197   : > { %v1117_v44 = vpop.eup %1116 }
 0x198   : > { %v611_v45 = vsel %vm544_vm7, %v1117_v44, 0.0 }
 0x199   : > { %v1119_v47 = vpop.eup %1118  ;;  %612 = vadd.xlane.f32.xlu0 %v611_v45  ;;  %609 = vadd.xlane.f32.xlu1 %v608_v46 }
 0x19a   : > { %v614_v48 = vsel %vm544_vm7, %v1119_v47, 0.0 }
 0x19d   : > { %615 = vadd.xlane.f32.xlu1 %v614_v48 }
 0x21a   : > { %v595_v51 = vpop.xlane.xlu0 %594 }
 0x21b   : > { %1120 = vrcp.f32 %v595_v51 }
 0x21e   : > { %v601_v52 = vpop.xlane.xlu0 %600  ;;  %v598_v53 = vpop.xlane.xlu1 %597 }
 0x21f   : > { %1122 = vrcp.f32 %v598_v53 }
 0x220   : > { %1124 = vrcp.f32 %v601_v52 }
 0x222   : > { %v607_v54 = vpop.xlane.xlu0 %606  ;;  %v604_v55 = vpop.xlane.xlu1 %603 }
 0x223   : > { %1126 = vrcp.f32 %v604_v55 }
 0x224   : > { %1128 = vrcp.f32 %v607_v54 }
 0x225   : > { %v1121_v58 = vpop.eup %1120 }
 0x226   : > { %v613_v56 = vpop.xlane.xlu0 %612  ;;  %v610_v57 = vpop.xlane.xlu1 %609  ;;  %v625_v61 = vmul.f32 %v1121_v58, %v1105_v30 }
 0x227   : > { %1130 = vrcp.f32 %v610_v57 }
 0x228   : > { %1132 = vrcp.f32 %v613_v56 }
 0x229   : > { %v1123_v59 = vpop.eup %1122 }
 0x22a   : > { %v616_v60 = vpop.xlane.xlu1 %615  ;;  %v626_v62 = vmul.f32 %v1123_v59, %v1109_v36  ;;  %v1125_v63 = vpop.eup %1124 }
 0x22b   : > { %1134 = vrcp.f32 %v616_v60  ;;  %v627_v4 = vmul.f32 %v1125_v63, %v1107_v34 }
 0x22c   : > { %v633_v2 = vpack.c.bf16 %v626_v62, %v625_v61 }
 0x22d   : > { %v1127_v3 = vpop.eup %1126 }
 0x22e   : > { %v628_v5 = vmul.f32 %v1127_v3, %v1111_v39  ;;  %1064 = vmatmul.mubr.msk.bf16.vlgmr.msra.gmra.mrb[8].mxu0 %vm544_vm7, %v633_v2  ;;  %v1129_v6 = vpop.eup %1128 }
 0x22f   : > { %1074 = vmatpush3.bf16.msra.mxu0 %v1102_v1  ;;  %1075 = vmatprep.mubr.msk.bf16.mxu0 %vm1145_vm0, %v1144_v0  ;;  %v629_v11 = vmul.f32 %v1129_v6, %v1113_v40 }
 0x230   : > { %v634_v8 = vpack.c.bf16 %v628_v5, %v627_v4 }
 0x231   : > { %v1131_v9 = vpop.eup %1130 }
 0x232   : > { %v1133_v10 = vpop.eup %1132  ;;  %v630_v12 = vmul.f32 %v1131_v9, %v1115_v43  ;;  %1070 = vmatmul.mubr.msk.bf16.vlgmr.msra.gmra.mrb[8].mxu1 %vm544_vm7, %v634_v8 }
 0x233   : > { %1080 = vmatpush3.bf16.msra.mxu1 %v1103_v7  ;;  %1081 = vmatprep.mubr.msk.bf16.mxu1 %vm1145_vm0, %v1144_v0  ;;  %v631_v15 = vmul.f32 %v1133_v10, %v1117_v44 }
 0x234   : > { %v635_v14 = vpack.c.bf16 %v630_v12, %v629_v11 }
 0x235   : > { %v1135_v13 = vpop.eup %1134 }
 0x236   : > { %v632_v16 = vmul.f32 %v1135_v13, %v1119_v47  ;;  %1076 = vmatmul.mubr.msk.bf16.vlgmr.msra.gmra.mrb[12].mxu0 %vm544_vm7, %v635_v14 }
 0x238   : > { %v636_v17 = vpack.c.bf16 %v632_v16, %v631_v15 }
 0x23a   : > { %1082 = vmatmul.mubr.msk.bf16.vlgmr.msra.gmra.mrb[12].mxu1 %vm544_vm7, %v636_v17 }
 0x301   : > { %v680_v18 = vpop.f32.mrb[8].mxu0 }
 0x302   : > { %v1013_v0 = vpack.c.bf16 %v680_v18, %v680_v18  ;;  %v1065_v19 = vpop.f32.mrb[9].mxu0 }
 0x303   : > { %v683_v20 = vpop.f32.mrb[10].mxu0 }
 0x304   : > { %870 = vst.msk [vmem:[%s1287_s6] sm:$0xf] %vm869_vm9, %v1013_v0  ;;  %v1014_v21 = vpack.c.bf16 %v683_v20, %v683_v20  ;;  %v1066_v22 = vpop.f32.mrb[11].mxu0 }
 0x305   : > { %v730_v23 = vpop.f32.mrb[8].mxu1 }
 0x306   : > { %871 = vst.msk [vmem:[%s1287_s6 + $0x4] sm:$0xf] %vm869_vm9, %v1014_v21  ;;  %v1015_v24 = vpack.c.bf16 %v730_v23, %v730_v23  ;;  %v1071_v25 = vpop.f32.mrb[9].mxu1 }
 0x307   : > { %v733_v26 = vpop.f32.mrb[10].mxu1 }
 0x308   : > { %872 = vst.msk [vmem:[%s1287_s6 + $0x8] sm:$0xf] %vm869_vm9, %v1015_v24  ;;  %v1016_v27 = vpack.c.bf16 %v733_v26, %v733_v26  ;;  %v1072_v28 = vpop.f32.mrb[11].mxu1 }
 0x309   : > { %v780_v29 = vpop.f32.mrb[12].mxu0 }
 0x30a   : > { %873 = vst.msk [vmem:[%s1287_s6 + $0xc] sm:$0xf] %vm869_vm9, %v1016_v27  ;;  %v1017_v30 = vpack.c.bf16 %v780_v29, %v780_v29  ;;  %v1077_v31 = vpop.f32.mrb[13].mxu0 }
 0x30b   : > { %v783_v32 = vpop.f32.mrb[14].mxu0 }
 0x30c   : > { %874 = vst.msk [vmem:[%s1287_s6 + $0x10] sm:$0xf] %vm869_vm9, %v1017_v30  ;;  %v1018_v33 = vpack.c.bf16 %v783_v32, %v783_v32  ;;  %v1078_v34 = vpop.f32.mrb[15].mxu0 }
 0x30d   : > { %v830_v35 = vpop.f32.mrb[12].mxu1 }
 0x30e   : > { %875 = vst.msk [vmem:[%s1287_s6 + $0x14] sm:$0xf] %vm869_vm9, %v1018_v33  ;;  %v1019_v36 = vpack.c.bf16 %v830_v35, %v830_v35  ;;  %v1083_v37 = vpop.f32.mrb[13].mxu1 }
 0x30f   : > { %v833_v38 = vpop.f32.mrb[14].mxu1 }
 0x310   : > { %876 = vst.msk [vmem:[%s1287_s6 + $0x18] sm:$0xf] %vm869_vm9, %v1019_v36  ;;  %v1020_v39 = vpack.c.bf16 %v833_v38, %v833_v38  ;;  %v1084_v40 = vpop.f32.mrb[15].mxu1 }
 0x312   : > { %877 = vst.msk [vmem:[%s1287_s6 + $0x1c] sm:$0xf] %vm869_vm9, %v1020_v39 }
 0x313 PF: > { %s14_s15 = sadd.s32 1, %s1142_s15  }
 0x314   : > { %p11_p4 = scmp.ge.s32.totalorder %s14_s15, 4  }
 0x316   :  { %13 = sbr.rel (!%p11_p4) target bundleno = 1 (0x1), region = 75 }

// kernel: transformer_forward.49
= control target key start
LH: loop header
LB: loop body
LE: loop exit
PB: predicated region body
PF: predicated region fallthrough
CT: control target
= control target key end

     0   :  { %s335_s1 = inlined_call_operand.vmem [shape: bf16[128,128], index: 1, kind: input, shape index: {}]   ;;  %s336_s0 = inlined_call_operand.vmem [shape: bf16[32,128], index: 0, kind: input, shape index: {}]   ;;  %s337_s2 = inlined_call_operand.vmem [shape: f32[1,128], index: 2, kind: input, shape index: {}]   ;;  %s338_s3 = inlined_call_operand.vmem [shape: bf16[32,128], index: 3, kind: output, shape index: {}]  }
   0x1   :  { %v266_v0 = vld [vmem:[%s335_s1] sm:$0xff]   ;;  %v267_v1 = vld [vmem:[%s335_s1 + $0x8] sm:$0xff]   ;;  %v268_v2 = vld [vmem:[%s335_s1 + $0x10] sm:$0xff]  }
   0x2   :  { %246 = vmatprep.subr.bf16.mxu0 %v266_v0  ;;  %v269_v3 = vld [vmem:[%s335_s1 + $0x18] sm:$0xff]   ;;  %v274_v4 = vld [vmem:[%s336_s0] sm:$0xff]   ;;  %v271_v6 = vld [vmem:[%s335_s1 + $0x28] sm:$0xff]  }
   0x3   :  { %247 = vmatpush3.bf16.msra.mxu0 %v266_v0  ;;  %262 = vmatprep.mubr.bf16.mxu0 %v274_v4  ;;  %v270_v5 = vld [vmem:[%s335_s1 + $0x20] sm:$0xff]   ;;  %v272_v7 = vld [vmem:[%s335_s1 + $0x30] sm:$0xff]   ;;  %v273_v8 = vld [vmem:[%s335_s1 + $0x38] sm:$0xff]  }
   0x4   :  { %248 = vmatprep.subr.bf16.mxu0 %v267_v1  ;;  %v275_v9 = vld [vmem:[%s336_s0 + $0x8] sm:$0xff]   ;;  %v216_v11 = vld [vmem:[%s337_s2] ss:$0 sm:$0xff] }
   0x7   :  { %249 = vmatpush3.bf16.msra.mxu0 %v267_v1 }
   0x8   :  { %250 = vmatprep.subr.bf16.mxu0 %v268_v2 }
   0xb   :  { %251 = vmatpush3.bf16.msra.mxu0 %v268_v2 }
   0xc   :  { %252 = vmatprep.subr.bf16.mxu0 %v269_v3 }
   0xf   :  { %253 = vmatpush3.bf16.msra.mxu0 %v269_v3 }
  0x10   :  { %254 = vmatprep.subr.bf16.mxu0 %v270_v5 }
  0x13   :  { %255 = vmatpush3.bf16.msra.mxu0 %v270_v5 }
  0x14   :  { %256 = vmatprep.subr.bf16.mxu0 %v271_v6 }
  0x17   :  { %257 = vmatpush3.bf16.msra.mxu0 %v271_v6 }
  0x18   :  { %258 = vmatprep.subr.bf16.mxu0 %v272_v7 }
  0x1b   :  { %259 = vmatpush3.bf16.msra.mxu0 %v272_v7 }
  0x1c   :  { %260 = vmatprep.subr.bf16.mxu0 %v273_v8 }
  0x1f   :  { %261 = vmatpush3.bf16.msra.mxu0 %v273_v8 }
  0x22   :  { %263 = vmatmul.mubr.bf16.vlgmr.msra.gmra.mrb[0].mxu0 %v275_v9 }
  0xf5   :  { %v264_v10 = vpop.f32.mrb[0].mxu0 }
  0xf6   :  { %v141_v12 = vpop.f32.mrb[1].mxu0  ;;  %v180_v14 = vadd.f32 %v264_v10, %v216_v11 }
  0xf7   :  { %v265_v13 = vpop.f32.mrb[2].mxu0  ;;  %v178_v17 = vadd.f32 %v216_v11, %v141_v12 }
  0xf8   :  { %v181_v15 = vadd.f32 %v265_v13, %v216_v11  ;;  %v144_v16 = vpop.f32.mrb[3].mxu0 }
  0xf9   :  { %v179_v18 = vadd.f32 %v216_v11, %v144_v16 }
  0xfa   :  { %v233_v19 = vpack.c.bf16 %v181_v15, %v180_v14 }
  0xfb   :  { %v228_v20 = vpack.c.bf16 %v179_v18, %v178_v17 }
  0xfc   :  { %235 = vst [vmem:[%s338_s3 + $0x8] sm:$0xff] %v233_v19  }
  0xfd   :  { %229 = vst [vmem:[%s338_s3] sm:$0xff] %v228_v20  }

// kernel: transformer_forward.50
= control target key start
LH: loop header
LB: loop body
LE: loop exit
PB: predicated region body
PF: predicated region fallthrough
CT: control target
= control target key end

     0   :  { %s188_s0 = inlined_call_operand.vmem [shape: f32[32,128], index: 0, kind: input, shape index: {}]   ;;  %s189_s1 = inlined_call_operand.vmem [shape: bf16[32,128], index: 1, kind: input, shape index: {}]   ;;  %s190_s2 = inlined_call_operand.vmem [shape: f32[1,128], index: 2, kind: input, shape index: {}]   ;;  %s191_s3 = inlined_call_operand.vmem [shape: f32[1,128], index: 3, kind: input, shape index: {}]   ;;  %s192_s4 = inlined_call_operand.vmem [shape: f32[32,128], index: 4, kind: output, shape index: {}]  }
   0x1   :  { %v17_v0 = vld [vmem:[%s188_s0] sm:$0xff]  ;;  %v19_v3 = vld [vmem:[%s188_s0 + $0x10] sm:$0xff]  ;;  %v118_v4 = vld [vmem:[%s189_s1 + $0x8] sm:$0xff]  }
   0x2   :  { %v111_v1 = vld [vmem:[%s189_s1] sm:$0xff]   ;;  %v116_v6 = vunpack.c.l.bf16 %v118_v4  ;;  %v18_v7 = vld [vmem:[%s188_s0 + $0x8] sm:$0xff]  ;;  %v117_v8 = vunpack.c.h.bf16 %v118_v4  ;;  %v20_v10 = vld [vmem:[%s188_s0 + $0x18] sm:$0xff] }
   0x3   :  { %v112_v2 = vunpack.c.l.bf16 %v111_v1  ;;  %v113_v5 = vunpack.c.h.bf16 %v111_v1  ;;  %v108_v43 = vld [vmem:[%s190_s2] ss:$0 sm:$0xff] }
   0x4   :  { %v31_v11 = vadd.f32 %v116_v6, %v19_v3  ;;  %v32_v13 = vadd.f32 %v117_v8, %v20_v10  ;;  %v109_v45 = vld [vmem:[%s191_s3] ss:$0 sm:$0xff] }
   0x5   :  { %v29_v9 = vadd.f32 %v112_v2, %v17_v0  ;;  %v30_v12 = vadd.f32 %v113_v5, %v18_v7 }
   0x6   :  { %37 = vadd.xlane.f32.xlu1 %v31_v11 }
   0x7   :  { %33 = vadd.xlane.f32.xlu0 %v29_v9 }
   0xa   :  { %39 = vadd.xlane.f32.xlu1 %v32_v13 }
   0xb   :  { %35 = vadd.xlane.f32.xlu0 %v30_v12 }
  0x93   :  { %v38_v16 = vpop.xlane.xlu1 %37 }
  0x94   :  { %v34_v14 = vpop.xlane.xlu0 %33  ;;  %v44_v17 = vmul.f32 0.0078125, %v38_v16 }
  0x95   :  { %v42_v15 = vmul.f32 0.0078125, %v34_v14 }
  0x96   :  { %v48_v19 = vsub.f32 %v31_v11, %v44_v17 }
  0x97   :  { %v46_v18 = vsub.f32 %v29_v9, %v42_v15  ;;  %v40_v23 = vpop.xlane.xlu1 %39 }
  0x98   :  { %v36_v20 = vpop.xlane.xlu0 %35  ;;  %v45_v24 = vmul.f32 0.0078125, %v40_v23  ;;  %v52_v26 = vmul.f32 %v48_v19, %v48_v19 }
  0x99   :  { %v43_v21 = vmul.f32 0.0078125, %v36_v20  ;;  %v50_v22 = vmul.f32 %v46_v18, %v46_v18 }
  0x9a   :  { %v49_v27 = vsub.f32 %v32_v13, %v45_v24 }
  0x9b   :  { %v47_v25 = vsub.f32 %v30_v12, %v43_v21  ;;  %54 = vadd.xlane.f32.xlu0 %v50_v22 }
  0x9c   :  { %v53_v29 = vmul.f32 %v49_v27, %v49_v27 }
  0x9d   :  { %v51_v28 = vmul.f32 %v47_v25, %v47_v25 }
  0x9f   :  { %58 = vadd.xlane.f32.xlu0 %v52_v26  ;;  %56 = vadd.xlane.f32.xlu1 %v51_v28 }
  0xa3   :  { %60 = vadd.xlane.f32.xlu1 %v53_v29 }
 0x128   :  { %v55_v30 = vpop.xlane.xlu0 %54 }
 0x129   :  { %v62_v31 = vmul.f32 0.0078125, %v55_v30 }
 0x12b   :  { %v66_v32 = vadd.f32 1e-05, %v62_v31 }
 0x12c   :  { %v57_v33 = vpop.xlane.xlu1 %56  ;;  %v59_v34 = vpop.xlane.xlu0 %58 }
 0x12d   :  { %119 = vrsqrt.f32 %v66_v32  ;;  %v63_v35 = vmul.f32 0.0078125, %v57_v33  ;;  %v64_v36 = vmul.f32 0.0078125, %v59_v34 }
 0x12f   :  { %v67_v37 = vadd.f32 1e-05, %v63_v35  ;;  %v68_v38 = vadd.f32 1e-05, %v64_v36 }
 0x130   :  { %v61_v39 = vpop.xlane.xlu1 %60 }
 0x131   :  { %121 = vrsqrt.f32 %v67_v37  ;;  %v65_v40 = vmul.f32 0.0078125, %v61_v39 }
 0x132   :  { %123 = vrsqrt.f32 %v68_v38 }
 0x133   :  { %v69_v41 = vadd.f32 1e-05, %v65_v40 }
 0x135   :  { %125 = vrsqrt.f32 %v69_v41 }
 0x137   :  { %v120_v42 = vpop.eup %119 }
 0x138   :  { %v74_v44 = vmul.f32 %v120_v42, %v46_v18 }
 0x13a   :  { %v85_v46 = vmul.f32 %v108_v43, %v74_v44 }
 0x13b   :  { %v122_v47 = vpop.eup %121 }
 0x13c   :  { %v124_v48 = vpop.eup %123  ;;  %v96_v49 = vadd.f32 %v109_v45, %v85_v46  ;;  %v75_v50 = vmul.f32 %v122_v47, %v47_v25 }
 0x13d   :  { %v76_v51 = vmul.f32 %v124_v48, %v48_v19 }
 0x13e   :  { %100 = vst [vmem:[%s192_s4] sm:$0xff] %v96_v49  ;;  %v86_v52 = vmul.f32 %v108_v43, %v75_v50 }
 0x13f   :  { %v126_v53 = vpop.eup %125  ;;  %v87_v54 = vmul.f32 %v108_v43, %v76_v51 }
 0x140   :  { %v97_v55 = vadd.f32 %v109_v45, %v86_v52  ;;  %v77_v56 = vmul.f32 %v126_v53, %v49_v27 }
 0x141   :  { %v98_v57 = vadd.f32 %v109_v45, %v87_v54 }
 0x142   :  { %101 = vst [vmem:[%s192_s4 + $0x8] sm:$0xff] %v97_v55  ;;  %v88_v58 = vmul.f32 %v108_v43, %v77_v56 }
 0x143   :  { %102 = vst [vmem:[%s192_s4 + $0x10] sm:$0xff] %v98_v57 }
 0x144   :  { %v99_v59 = vadd.f32 %v109_v45, %v88_v58 }
 0x146   :  { %103 = vst [vmem:[%s192_s4 + $0x18] sm:$0xff] %v99_v59 }

// kernel: transformer_forward.36
= control target key start
LH: loop header
LB: loop body
LE: loop exit
PB: predicated region body
PF: predicated region fallthrough
CT: control target
= control target key end

     0   :  { %s1159_s15 = smov 0   ;;  %s1279_s0 = inlined_call_operand.vmem [shape: bf16[2,4,16,32], index: 0, kind: input, shape index: {}]   ;;  %s1280_s1 = inlined_call_operand.vmem [shape: bf16[2,4,16,32], index: 1, kind: input, shape index: {}]   ;;  %s1281_s2 = inlined_call_operand.vmem [shape: bf16[2,4,16,32], index: 2, kind: input, shape index: {}]   ;;  %s1282_s3 = inlined_call_operand.vmem [shape: s32[2,1,16], index: 3, kind: input, shape index: {}]   ;;  %s1283_s4 = inlined_call_operand.vmem [shape: bf16[2,4,16,32], index: 4, kind: output, shape index: {}]  }
   0x1 LB: > { %s953_s16 = sadd.s32 4294967295, %s1129_s15   ;;  %p957_p0 = scmp.ge.s32.totalorder %s1129_s15, 1  ;;  %s1129_s15 = sphi %s1159_s15, %s14_s15  }
   0x2   : > { %p190_p1 = scmp.lt.s32.totalorder %s1129_s15, 3 }
   0x4   : > { %p191_p2 = pnand %p957_p0, %p190_p1 }
   0x5   : > { %p229_p3 = scmp.lt.s32.totalorder (!%p191_p2), %s953_s16, 1  ;;  %v1131_v0 = vmov (!%p191_p2), 0.0   ;;  %vm1132_vm0 = vmmov (!%p191_p2), 0   ;;  %vm297_vm1 = vcmask (!%p191_p2), 261120   ;;  %v518_v29 = vlaneseq (!%p191_p2) }
   0x6   : > { %194 = sbr.rel (%p191_p2) target bundleno = 787 (0x313), region = 36  ;;  %1024 = vmatprep.subr.bf16.mxu0 (!%p191_p2), %v1131_v0  ;;  %1030 = vmatprep.subr.bf16.mxu1 (!%p191_p2), %v1131_v0  ;;  %v1133_v33 = vmov (!%p191_p2), 0   ;;  %vm531_vm4 = vcmask (!%p191_p2), 130048   ;;  %vm856_vm5 = vcmask (!%p191_p2), 257024  }
   0x7   : > { %1026 = vmatprep.mubr.msk.bf16.mxu0 (!%p191_p2), %vm1132_vm0, %v1131_v0  ;;  %1032 = vmatprep.mubr.msk.bf16.mxu1 (!%p191_p2), %vm1132_vm0, %v1131_v0  ;;  %v519_v31 = vshrl.u32 (!%p191_p2), %v518_v29, 7 }
   0x9   : > { %v520_v32 = vsub.s32 (!%p191_p2), 0, %v519_v31 }
   0xd   : > { %s1285_s16 = smov (!%p229_p3, %s953_s16), 1 }
   0xe   : > { %s1176_s17 = sshll.u32 %s1285_s16, 5  ;;  %s246_s26 = scalar_lea.vmem %s1282_s3, %s1285_s16 }
   0xf   : > { %s238_s20 = scalar_lea.vmem %s1280_s1, %s1176_s17  ;;  %s233_s23 = scalar_lea.vmem %s1279_s0, %s1176_s17  ;;  %v278_v30 = vld [vmem:[%s246_s26] sm:$0x1] }
  0x10   : > { %v1083_v1 = vld [vmem:[%s238_s20] sm:$0xff]   ;;  %v1084_v2 = vld [vmem:[%s238_s20 + $0x8] sm:$0xff]   ;;  %v1085_v6 = vld [vmem:[%s238_s20 + $0x10] sm:$0xff]   ;;  %vm516_vm2 = vcmp.ne.s32.totalorder %v278_v30, 0  ;;  %s1238_s29 = scalar_lea.vmem %s1281_s2, %s1176_s17  ;;  %s1258_s6 = scalar_lea.vmem %s1283_s4, %s1176_s17 }
  0x11   : > { %v302_v3 = vsel %vm297_vm1, %v1083_v1, 0  ;;  %v254_v4 = vld [vmem:[%s233_s23] sm:$0xf]  ;;  %v255_v5 = vld [vmem:[%s233_s23 + $0x4] sm:$0xf]  ;;  %v359_v7 = vsel %vm297_vm1, %v1084_v2, 0 }
  0x12   : > { %1025 = vmatpush3.bf16.xpose.msra.mxu0 %v302_v3  ;;  %v279_v8 = vmul.bf16 1043676725, %v254_v4  ;;  %v280_v9 = vmul.bf16 1043676725, %v255_v5  ;;  %v1086_v10 = vld [vmem:[%s238_s20 + $0x18] sm:$0xff]   ;;  %1031 = vmatpush3.bf16.xpose.msra.mxu1 %v359_v7  ;;  %v416_v19 = vsel %vm297_vm1, %v1085_v6, 0 }
  0x13   : > { %v256_v11 = vld [vmem:[%s233_s23 + $0x8] sm:$0xf]  ;;  %v257_v12 = vld [vmem:[%s233_s23 + $0xc] sm:$0xf]  ;;  %1036 = vmatprep.subr.bf16.mxu0 %v1131_v0  ;;  %1042 = vmatprep.subr.bf16.mxu1 %v1131_v0  ;;  %v258_v17 = vld [vmem:[%s233_s23 + $0x10] sm:$0xf] }
  0x14   : > { %v281_v13 = vmul.bf16 1043676725, %v256_v11  ;;  %v282_v14 = vmul.bf16 1043676725, %v257_v12  ;;  %v966_v15 = vcombine.low %v279_v8, %v280_v9  ;;  %v259_v18 = vld [vmem:[%s233_s23 + $0x14] sm:$0xf] }
  0x15   : > { %v260_v20 = vld [vmem:[%s233_s23 + $0x18] sm:$0xf]  ;;  %v261_v21 = vld [vmem:[%s233_s23 + $0x1c] sm:$0xf]  ;;  %v473_v22 = vsel %vm297_vm1, %v1086_v10, 0  ;;  %v517_v34 = vsel %vm516_vm2, 1, %v1133_v33 }
  0x16   : > { %v969_v16 = vcombine.low %v281_v13, %v282_v14  ;;  %v283_v23 = vmul.bf16 1043676725, %v258_v17  ;;  %v284_v24 = vmul.bf16 1043676725, %v259_v18  ;;  %v285_v25 = vmul.bf16 1043676725, %v260_v20 }
  0x17   : > { %v286_v26 = vmul.bf16 1043676725, %v261_v21  ;;  %v521_v35 = vrot.slane %v517_v34, %v520_v32 }
  0x18   : > { %v972_v27 = vcombine.low %v283_v23, %v284_v24 }
  0x19   : > { %1027 = vmatmul.mubr.msk.bf16.vlgmr.msra.gmra.mrb[0].mxu0 %vm297_vm1, %v966_v15  ;;  %1033 = vmatmul.mubr.msk.bf16.vlgmr.msra.gmra.mrb[0].mxu1 %vm297_vm1, %v969_v16  ;;  %v975_v28 = vcombine.low %v285_v25, %v286_v26  ;;  %vm522_vm3 = vcmp.eq.s32.totalorder %v521_v35, 1 }
  0x1a   : > { %1037 = vmatpush3.bf16.xpose.msra.mxu0 %v416_v19  ;;  %1043 = vmatpush3.bf16.xpose.msra.mxu1 %v473_v22 }
  0x1b   : > { %1038 = vmatprep.mubr.msk.bf16.mxu0 %vm1132_vm0, %v1131_v0  ;;  %1044 = vmatprep.mubr.msk.bf16.mxu1 %vm1132_vm0, %v1131_v0 }
  0x1c   : > { %1048 = vmatprep.subr.bf16.mxu0 %v1131_v0  ;;  %1054 = vmatprep.subr.bf16.mxu1 %v1131_v0 }
  0x21   : > { %1039 = vmatmul.mubr.msk.bf16.vlgmr.msra.gmra.mrb[4].mxu0 %vm297_vm1, %v972_v27  ;;  %1045 = vmatmul.mubr.msk.bf16.vlgmr.msra.gmra.mrb[4].mxu1 %vm297_vm1, %v975_v28 }
  0x22   : > { %1050 = vmatprep.mubr.msk.bf16.mxu0 %vm1132_vm0, %v1131_v0  ;;  %1056 = vmatprep.mubr.msk.bf16.mxu1 %vm1132_vm0, %v1131_v0 }
  0xec   : > { %v338_v36 = vpop.f32.mrb[0].mxu0  ;;  %v395_v38 = vpop.f32.mrb[0].mxu1 }
  0xed   : > { %v523_v37 = vsel %vm522_vm3, %v338_v36, -1e+09  ;;  %v1028_v39 = vpop.f32.mrb[1].mxu0  ;;  %v525_v40 = vsel %vm522_vm3, %v395_v38, -1e+09  ;;  %v1034_v42 = vpop.f32.mrb[1].mxu1 }
  0xee   : > { %v341_v41 = vpop.f32.mrb[2].mxu0  ;;  %v532_v43 = vsel %vm531_vm4, %v523_v37, -inf  ;;  %v538_v45 = vsel %vm531_vm4, %v525_v40, -inf  ;;  %v398_v46 = vpop.f32.mrb[2].mxu1 }
  0xef   : > { %v524_v44 = vsel %vm522_vm3, %v341_v41, -1e+09  ;;  %533 = vmax.xlane.f32.xlu0 %v532_v43  ;;  %v1029_v47 = vpop.f32.mrb[3].mxu0  ;;  %539 = vmax.xlane.f32.xlu1 %v538_v45  ;;  %v526_v48 = vsel %vm522_vm3, %v398_v46, -1e+09  ;;  %v1035_v49 = vpop.f32.mrb[3].mxu1 }
  0xf0   : > { %v541_v50 = vsel %vm531_vm4, %v526_v48, -inf  ;;  %v535_v51 = vsel %vm531_vm4, %v524_v44, -inf  ;;  %v1087_v45 = vld [vmem:[%s1238_s29] sm:$0xff]   ;;  %v1088_v46 = vld [vmem:[%s1238_s29 + $0x8] sm:$0xff]  }
  0xf1   : > { %1049 = vmatpush3.bf16.msra.mxu0 %v1087_v45  ;;  %1055 = vmatpush3.bf16.msra.mxu1 %v1088_v46 }
  0xf2   : > { %1060 = vmatprep.subr.bf16.mxu0 %v1131_v0  ;;  %1066 = vmatprep.subr.bf16.mxu1 %v1131_v0 }
  0xf3   : > { %536 = vmax.xlane.f32.xlu0 %v535_v51  ;;  %542 = vmax.xlane.f32.xlu1 %v541_v50 }
  0xf4   : > { %v452_v52 = vpop.f32.mrb[4].mxu0  ;;  %v509_v55 = vpop.f32.mrb[4].mxu1 }
  0xf5   : > { %v527_v53 = vsel %vm522_vm3, %v452_v52, -1e+09  ;;  %v1040_v54 = vpop.f32.mrb[5].mxu0  ;;  %v529_v57 = vsel %vm522_vm3, %v509_v55, -1e+09  ;;  %v1046_v59 = vpop.f32.mrb[5].mxu1 }
  0xf6   : > { %v455_v56 = vpop.f32.mrb[6].mxu0  ;;  %v544_v58 = vsel %vm531_vm4, %v527_v53, -inf  ;;  %v512_v62 = vpop.f32.mrb[6].mxu1  ;;  %v550_v3 = vsel %vm531_vm4, %v529_v57, -inf }
  0xf7   : > { %v528_v60 = vsel %vm522_vm3, %v455_v56, -1e+09  ;;  %545 = vmax.xlane.f32.xlu0 %v544_v58  ;;  %v1041_v61 = vpop.f32.mrb[7].mxu0  ;;  %v530_v63 = vsel %vm522_vm3, %v512_v62, -1e+09  ;;  %v1047_v2 = vpop.f32.mrb[7].mxu1 }
  0xf8   : > { %v547_v1 = vsel %vm531_vm4, %v528_v60, -inf  ;;  %v553_v4 = vsel %vm531_vm4, %v530_v63, -inf }
  0xf9   : > { %548 = vmax.xlane.f32.xlu1 %v547_v1 }
  0xfb   : > { %551 = vmax.xlane.f32.xlu0 %v550_v3  ;;  %v1090_v3 = vld [vmem:[%s1238_s29 + $0x18] sm:$0xff]  }
  0xfd   : > { %554 = vmax.xlane.f32.xlu1 %v553_v4 }
 0x17c   : > { %v534_v5 = vpop.xlane.xlu0 %533  ;;  %v540_v6 = vpop.xlane.xlu1 %539 }
 0x17d   : > { %v556_v7 = vsub.f32 %v523_v37, %v534_v5  ;;  %v558_v8 = vsub.f32 %v525_v40, %v540_v6 }
 0x17f   : > { %v564_v9 = vmul.f32 1.442695, %v556_v7  ;;  %v568_v10 = vmul.f32 1.442695, %v558_v8 }
 0x180   : > { %v537_v11 = vpop.xlane.xlu0 %536  ;;  %v543_v12 = vpop.xlane.xlu1 %542 }
 0x181   : > { %1091 = vpow2.f32 %v564_v9  ;;  %v557_v13 = vsub.f32 %v524_v44, %v537_v11  ;;  %v559_v14 = vsub.f32 %v526_v48, %v543_v12 }
 0x182   : > { %1093 = vpow2.f32 %v568_v10 }
 0x183   : > { %v566_v15 = vmul.f32 1.442695, %v557_v13  ;;  %v570_v16 = vmul.f32 1.442695, %v559_v14 }
 0x184   : > { %v546_v17 = vpop.xlane.xlu0 %545 }
 0x185   : > { %1095 = vpow2.f32 %v566_v15  ;;  %v560_v18 = vsub.f32 %v527_v53, %v546_v17 }
 0x186   : > { %v549_v19 = vpop.xlane.xlu1 %548  ;;  %1097 = vpow2.f32 %v570_v16 }
 0x187   : > { %v572_v20 = vmul.f32 1.442695, %v560_v18  ;;  %v561_v21 = vsub.f32 %v528_v60, %v549_v19  ;;  %v1089_v60 = vld [vmem:[%s1238_s29 + $0x10] sm:$0xff]  }
 0x188   : > { %v552_v22 = vpop.xlane.xlu0 %551 }
 0x189   : > { %1099 = vpow2.f32 %v572_v20  ;;  %v574_v23 = vmul.f32 1.442695, %v561_v21  ;;  %v562_v24 = vsub.f32 %v529_v57, %v552_v22 }
 0x18a   : > { %v555_v25 = vpop.xlane.xlu1 %554 }
 0x18b   : > { %v1092_v26 = vpop.eup %1091  ;;  %1101 = vpow2.f32 %v574_v23  ;;  %v576_v27 = vmul.f32 1.442695, %v562_v24  ;;  %v563_v28 = vsub.f32 %v530_v63, %v555_v25 }
 0x18c   : > { %v580_v29 = vsel %vm531_vm4, %v1092_v26, 0.0  ;;  %v1094_v30 = vpop.eup %1093 }
 0x18d   : > { %1103 = vpow2.f32 %v576_v27  ;;  %v578_v31 = vmul.f32 1.442695, %v563_v28  ;;  %581 = vadd.xlane.f32.xlu0 %v580_v29  ;;  %v586_v33 = vsel %vm531_vm4, %v1094_v30, 0.0 }
 0x18f   : > { %v1096_v32 = vpop.eup %1095  ;;  %1105 = vpow2.f32 %v578_v31 }
 0x190   : > { %v583_v34 = vsel %vm531_vm4, %v1096_v32, 0.0  ;;  %v1098_v35 = vpop.eup %1097 }
 0x191   : > { %587 = vadd.xlane.f32.xlu0 %v586_v33  ;;  %584 = vadd.xlane.f32.xlu1 %v583_v34  ;;  %v589_v38 = vsel %vm531_vm4, %v1098_v35, 0.0 }
 0x193   : > { %v1100_v36 = vpop.eup %1099 }
 0x194   : > { %v592_v37 = vsel %vm531_vm4, %v1100_v36, 0.0 }
 0x195   : > { %v1102_v39 = vpop.eup %1101  ;;  %593 = vadd.xlane.f32.xlu0 %v592_v37  ;;  %590 = vadd.xlane.f32.xlu1 %v589_v38 }
 0x196   : > { %v595_v42 = vsel %vm531_vm4, %v1102_v39, 0.0 }
 0x197   : > { %v1104_v40 = vpop.eup %1103 }
 0x198   : > { %v598_v41 = vsel %vm531_vm4, %v1104_v40, 0.0 }
 0x199   : > { %v1106_v43 = vpop.eup %1105  ;;  %599 = vadd.xlane.f32.xlu0 %v598_v41  ;;  %596 = vadd.xlane.f32.xlu1 %v595_v42 }
 0x19a   : > { %v601_v44 = vsel %vm531_vm4, %v1106_v43, 0.0 }
 0x19d   : > { %602 = vadd.xlane.f32.xlu1 %v601_v44 }
 0x21a   : > { %v582_v47 = vpop.xlane.xlu0 %581 }
 0x21b   : > { %1107 = vrcp.f32 %v582_v47 }
 0x21e   : > { %v588_v48 = vpop.xlane.xlu0 %587  ;;  %v585_v49 = vpop.xlane.xlu1 %584 }
 0x21f   : > { %1109 = vrcp.f32 %v585_v49 }
 0x220   : > { %1111 = vrcp.f32 %v588_v48 }
 0x222   : > { %v594_v50 = vpop.xlane.xlu0 %593  ;;  %v591_v51 = vpop.xlane.xlu1 %590 }
 0x223   : > { %1113 = vrcp.f32 %v591_v51 }
 0x224   : > { %1115 = vrcp.f32 %v594_v50 }
 0x225   : > { %v1108_v54 = vpop.eup %1107 }
 0x226   : > { %v600_v52 = vpop.xlane.xlu0 %599  ;;  %v597_v53 = vpop.xlane.xlu1 %596  ;;  %v612_v57 = vmul.f32 %v1108_v54, %v1092_v26 }
 0x227   : > { %1117 = vrcp.f32 %v597_v53 }
 0x228   : > { %1119 = vrcp.f32 %v600_v52 }
 0x229   : > { %v1110_v55 = vpop.eup %1109 }
 0x22a   : > { %v603_v56 = vpop.xlane.xlu1 %602  ;;  %v613_v58 = vmul.f32 %v1110_v55, %v1096_v32  ;;  %v1112_v59 = vpop.eup %1111 }
 0x22b   : > { %1121 = vrcp.f32 %v603_v56  ;;  %v614_v63 = vmul.f32 %v1112_v59, %v1094_v30 }
 0x22c   : > { %v620_v61 = vpack.c.bf16 %v613_v58, %v612_v57 }
 0x22d   : > { %v1114_v62 = vpop.eup %1113 }
 0x22e   : > { %v615_v1 = vmul.f32 %v1114_v62, %v1098_v35  ;;  %1051 = vmatmul.mubr.msk.bf16.vlgmr.msra.gmra.mrb[8].mxu0 %vm531_vm4, %v620_v61  ;;  %v1116_v2 = vpop.eup %1115 }
 0x22f   : > { %1061 = vmatpush3.bf16.msra.mxu0 %v1089_v60  ;;  %1062 = vmatprep.mubr.msk.bf16.mxu0 %vm1132_vm0, %v1131_v0  ;;  %v616_v7 = vmul.f32 %v1116_v2, %v1100_v36 }
 0x230   : > { %v621_v4 = vpack.c.bf16 %v615_v1, %v614_v63 }
 0x231   : > { %v1118_v5 = vpop.eup %1117 }
 0x232   : > { %v1120_v6 = vpop.eup %1119  ;;  %v617_v8 = vmul.f32 %v1118_v5, %v1102_v39  ;;  %1057 = vmatmul.mubr.msk.bf16.vlgmr.msra.gmra.mrb[8].mxu1 %vm531_vm4, %v621_v4 }
 0x233   : > { %1067 = vmatpush3.bf16.msra.mxu1 %v1090_v3  ;;  %1068 = vmatprep.mubr.msk.bf16.mxu1 %vm1132_vm0, %v1131_v0  ;;  %v618_v11 = vmul.f32 %v1120_v6, %v1104_v40 }
 0x234   : > { %v622_v10 = vpack.c.bf16 %v617_v8, %v616_v7 }
 0x235   : > { %v1122_v9 = vpop.eup %1121 }
 0x236   : > { %v619_v12 = vmul.f32 %v1122_v9, %v1106_v43  ;;  %1063 = vmatmul.mubr.msk.bf16.vlgmr.msra.gmra.mrb[12].mxu0 %vm531_vm4, %v622_v10 }
 0x238   : > { %v623_v13 = vpack.c.bf16 %v619_v12, %v618_v11 }
 0x23a   : > { %1069 = vmatmul.mubr.msk.bf16.vlgmr.msra.gmra.mrb[12].mxu1 %vm531_vm4, %v623_v13 }
 0x301   : > { %v667_v14 = vpop.f32.mrb[8].mxu0 }
 0x302   : > { %v1000_v0 = vpack.c.bf16 %v667_v14, %v667_v14  ;;  %v1052_v15 = vpop.f32.mrb[9].mxu0 }
 0x303   : > { %v670_v16 = vpop.f32.mrb[10].mxu0 }
 0x304   : > { %857 = vst.msk [vmem:[%s1258_s6] sm:$0xf] %vm856_vm5, %v1000_v0  ;;  %v1001_v17 = vpack.c.bf16 %v670_v16, %v670_v16  ;;  %v1053_v18 = vpop.f32.mrb[11].mxu0 }
 0x305   : > { %v717_v19 = vpop.f32.mrb[8].mxu1 }
 0x306   : > { %858 = vst.msk [vmem:[%s1258_s6 + $0x4] sm:$0xf] %vm856_vm5, %v1001_v17  ;;  %v1002_v20 = vpack.c.bf16 %v717_v19, %v717_v19  ;;  %v1058_v21 = vpop.f32.mrb[9].mxu1 }
 0x307   : > { %v720_v22 = vpop.f32.mrb[10].mxu1 }
 0x308   : > { %859 = vst.msk [vmem:[%s1258_s6 + $0x8] sm:$0xf] %vm856_vm5, %v1002_v20  ;;  %v1003_v23 = vpack.c.bf16 %v720_v22, %v720_v22  ;;  %v1059_v24 = vpop.f32.mrb[11].mxu1 }
 0x309   : > { %v767_v25 = vpop.f32.mrb[12].mxu0 }
 0x30a   : > { %860 = vst.msk [vmem:[%s1258_s6 + $0xc] sm:$0xf] %vm856_vm5, %v1003_v23  ;;  %v1004_v26 = vpack.c.bf16 %v767_v25, %v767_v25  ;;  %v1064_v27 = vpop.f32.mrb[13].mxu0 }
 0x30b   : > { %v770_v28 = vpop.f32.mrb[14].mxu0 }
 0x30c   : > { %861 = vst.msk [vmem:[%s1258_s6 + $0x10] sm:$0xf] %vm856_vm5, %v1004_v26  ;;  %v1005_v29 = vpack.c.bf16 %v770_v28, %v770_v28  ;;  %v1065_v30 = vpop.f32.mrb[15].mxu0 }
 0x30d   : > { %v817_v31 = vpop.f32.mrb[12].mxu1 }
 0x30e   : > { %862 = vst.msk [vmem:[%s1258_s6 + $0x14] sm:$0xf] %vm856_vm5, %v1005_v29  ;;  %v1006_v32 = vpack.c.bf16 %v817_v31, %v817_v31  ;;  %v1070_v33 = vpop.f32.mrb[13].mxu1 }
 0x30f   : > { %v820_v34 = vpop.f32.mrb[14].mxu1 }
 0x310   : > { %863 = vst.msk [vmem:[%s1258_s6 + $0x18] sm:$0xf] %vm856_vm5, %v1006_v32  ;;  %v1007_v35 = vpack.c.bf16 %v820_v34, %v820_v34  ;;  %v1071_v36 = vpop.f32.mrb[15].mxu1 }
 0x312   : > { %864 = vst.msk [vmem:[%s1258_s6 + $0x1c] sm:$0xf] %vm856_vm5, %v1007_v35 }
 0x313 PF: > { %s14_s15 = sadd.s32 1, %s1129_s15  }
 0x314   : > { %p11_p4 = scmp.ge.s32.totalorder %s14_s15, 4  }
 0x316   :  { %13 = sbr.rel (!%p11_p4) target bundleno = 1 (0x1), region = 75 }

// kernel: transformer_forward.39
= control target key start
LH: loop header
LB: loop body
LE: loop exit
PB: predicated region body
PF: predicated region fallthrough
CT: control target
= control target key end

     0   :  { %v543_v1 = vmov 0   ;;  %v43_v35 = vlaneseq  ;;  %s688_s1 = inlined_call_operand.vmem [shape: bf16[128,256], index: 1, kind: input, shape index: {}]   ;;  %s689_s0 = inlined_call_operand.vmem [shape: bf16[32,128], index: 0, kind: input, shape index: {}]   ;;  %s690_s3 = inlined_call_operand.vmem [shape: bf16[256,128], index: 3, kind: input, shape index: {}]   ;;  %s691_s2 = inlined_call_operand.vmem [shape: f32[1,256], index: 2, kind: input, shape index: {}]   ;;  %s692_s4 = inlined_call_operand.vmem [shape: f32[1,128], index: 4, kind: input, shape index: {}]   ;;  %s693_s5 = inlined_call_operand.vmem [shape: bf16[32,128], index: 5, kind: output, shape index: {}]  }
   0x1   :  { %v501_v0 = vld [vmem:[%s688_s1 + $0x4] ss:$8 sps:$4 sm:$0xff]   ;;  %177 = vmatprep.mubr.bf16.mxu0 %v543_v1  ;;  %v503_v2 = vld [vmem:[%s688_s1] ss:$8 sps:$4 sm:$0xff]   ;;  %v504_v3 = vld [vmem:[%s688_s1 + $0x14] ss:$8 sps:$4 sm:$0xff]  }
   0x2   :  { %145 = vmatprep.subr.bf16.mxu0 %v501_v0  ;;  %v506_v4 = vld [vmem:[%s688_s1 + $0x10] ss:$8 sps:$4 sm:$0xff]   ;;  %v507_v5 = vld [vmem:[%s688_s1 + $0x24] ss:$8 sps:$4 sm:$0xff]   ;;  %v509_v6 = vld [vmem:[%s688_s1 + $0x20] ss:$8 sps:$4 sm:$0xff]  }
   0x3   :  { %146 = vmatpush1.bf16.msra.mxu0 %v503_v2  ;;  %v510_v7 = vld [vmem:[%s688_s1 + $0x34] ss:$8 sps:$4 sm:$0xff]   ;;  %v512_v8 = vld [vmem:[%s688_s1 + $0x30] ss:$8 sps:$4 sm:$0xff]   ;;  %v513_v9 = vld [vmem:[%s688_s1 + $0x44] ss:$8 sps:$4 sm:$0xff]  }
   0x4   :  { %147 = vmatprep.subr.bf16.mxu0 %v504_v3  ;;  %v515_v10 = vld [vmem:[%s688_s1 + $0x40] ss:$8 sps:$4 sm:$0xff]   ;;  %v516_v12 = vld [vmem:[%s688_s1 + $0x54] ss:$8 sps:$4 sm:$0xff]   ;;  %v518_v17 = vld [vmem:[%s688_s1 + $0x50] ss:$8 sps:$4 sm:$0xff]  }
   0x5   :  { %v527_v11 = vld [vmem:[%s690_s3 + $0x40] sm:$0xff]   ;;  %v529_v14 = vld [vmem:[%s690_s3 + $0x48] sm:$0xff]   ;;  %v531_v16 = vld [vmem:[%s690_s3 + $0x50] sm:$0xff]   ;;  %v44_v36 = vshrl.u32 %v43_v35, 7 }
   0x6   :  { %v528_v13 = vld [vmem:[%s690_s3] sm:$0xff]   ;;  %472 = vmatprep.subr.bf16.mxu1 %v527_v11  ;;  %v530_v15 = vld [vmem:[%s690_s3 + $0x8] sm:$0xff]   ;;  %v532_v19 = vld [vmem:[%s690_s3 + $0x10] sm:$0xff]  }
   0x7   :  { %148 = vmatpush1.bf16.msra.mxu0 %v506_v4  ;;  %473 = vmatpush3.bf16.msra.mxu1 %v528_v13  ;;  %v519_v18 = vld [vmem:[%s688_s1 + $0x64] ss:$8 sps:$4 sm:$0xff]   ;;  %v521_v20 = vld [vmem:[%s688_s1 + $0x60] ss:$8 sps:$4 sm:$0xff]   ;;  %v533_v21 = vld [vmem:[%s690_s3 + $0x58] sm:$0xff]   ;;  %v45_v37 = vsub.s32 0, %v44_v36 }
   0x8   :  { %149 = vmatprep.subr.bf16.mxu0 %v507_v5  ;;  %474 = vmatprep.subr.bf16.mxu1 %v529_v14  ;;  %v522_v22 = vld [vmem:[%s688_s1 + $0x74] ss:$8 sps:$4 sm:$0xff]   ;;  %v535_v24 = vld [vmem:[%s690_s3 + $0x60] sm:$0xff]   ;;  %v524_v25 = vld [vmem:[%s688_s1 + $0x70] ss:$8 sps:$4 sm:$0xff]   ;;  %v49_v39 = vsub.s32 1, %v44_v36 }
   0x9   :  { %v534_v23 = vld [vmem:[%s690_s3 + $0x18] sm:$0xff]   ;;  %v536_v26 = vld [vmem:[%s690_s3 + $0x20] sm:$0xff]   ;;  %v537_v27 = vld [vmem:[%s690_s3 + $0x68] sm:$0xff]  }
   0xa   :  { %v525_v28 = vld [vmem:[%s689_s0] sm:$0xff]   ;;  %v526_v29 = vld [vmem:[%s689_s0 + $0x8] sm:$0xff]   ;;  %v539_v31 = vld [vmem:[%s690_s3 + $0x70] sm:$0xff]  }
   0xb   :  { %150 = vmatpush1.bf16.msra.mxu0 %v509_v6  ;;  %475 = vmatpush3.bf16.msra.mxu1 %v530_v15  ;;  %v538_v30 = vld [vmem:[%s690_s3 + $0x28] sm:$0xff]   ;;  %v540_v32 = vld [vmem:[%s690_s3 + $0x30] sm:$0xff]   ;;  %v541_v33 = vld [vmem:[%s690_s3 + $0x78] sm:$0xff]  }
   0xc   :  { %151 = vmatprep.subr.bf16.mxu0 %v510_v7  ;;  %476 = vmatprep.subr.bf16.mxu1 %v531_v16  ;;  %v542_v34 = vld [vmem:[%s690_s3 + $0x38] sm:$0xff]   ;;  %v41_v38 = vld [vmem:[%s691_s2] sm:$0x3] }
   0xd   :  { %v46_v40 = vrot.slane %v41_v38, %v45_v37  ;;  %v50_v41 = vrot.slane %v41_v38, %v49_v39 }
   0xf   :  { %152 = vmatpush1.bf16.msra.mxu0 %v512_v8  ;;  %477 = vmatpush3.bf16.msra.mxu1 %v532_v19 }
  0x10   :  { %153 = vmatprep.subr.bf16.mxu0 %v513_v9  ;;  %478 = vmatprep.subr.bf16.mxu1 %v533_v21 }
  0x13   :  { %154 = vmatpush1.bf16.msra.mxu0 %v515_v10  ;;  %479 = vmatpush3.bf16.msra.mxu1 %v534_v23  ;;  %v436_v10 = vld [vmem:[%s692_s4] ss:$0 sm:$0xff] }
  0x14   :  { %155 = vmatprep.subr.bf16.mxu0 %v516_v12  ;;  %480 = vmatprep.subr.bf16.mxu1 %v535_v24 }
  0x17   :  { %156 = vmatpush1.bf16.msra.mxu0 %v518_v17  ;;  %481 = vmatpush3.bf16.msra.mxu1 %v536_v26 }
  0x18   :  { %157 = vmatprep.subr.bf16.mxu0 %v519_v18  ;;  %482 = vmatprep.subr.bf16.mxu1 %v537_v27 }
  0x1b   :  { %158 = vmatpush1.bf16.msra.mxu0 %v521_v20  ;;  %483 = vmatpush3.bf16.msra.mxu1 %v538_v30 }
  0x1c   :  { %159 = vmatprep.subr.bf16.mxu0 %v522_v22  ;;  %484 = vmatprep.subr.bf16.mxu1 %v539_v31 }
  0x1f   :  { %160 = vmatpush1.bf16.msra.mxu0 %v524_v25  ;;  %485 = vmatpush3.bf16.msra.mxu1 %v540_v32 }
  0x20   :  { %486 = vmatprep.subr.bf16.mxu1 %v541_v33 }
  0x22   :  { %178 = vmatmul.mubr.bf16.vlgmr.msra.gmra.mrb[0].mxu0 %v525_v28 }
  0x23   :  { %187 = vmatprep.mubr.bf16.mxu0 %v543_v1  ;;  %487 = vmatpush3.bf16.msra.mxu1 %v542_v34 }
  0x2a   :  { %188 = vmatmul.mubr.bf16.gmra.mrb[4].mxu0 %v526_v29 }
  0xf5   :  { %v179_v42 = vpop.f32.mrb[0].mxu0 }
  0xf6   :  { %v180_v43 = vadd.f32 %v179_v42, %v46_v40  ;;  %v181_v44 = vpop.f32.mrb[1].mxu0 }
  0xf7   :  { %v182_v45 = vadd.f32 %v181_v44, %v50_v41  ;;  %v183_v46 = vpop.f32.mrb[2].mxu0 }
  0xf8   :  { %v184_v47 = vadd.f32 %v183_v46, %v46_v40  ;;  %v185_v48 = vpop.f32.mrb[3].mxu0  ;;  %v198_v50 = vmax.f32 %v180_v43, 0.0 }
  0xf9   :  { %v186_v49 = vadd.f32 %v185_v48, %v50_v41  ;;  %v199_v52 = vmax.f32 %v182_v45, 0.0 }
  0xfa   :  { %v200_v51 = vmax.f32 %v184_v47, 0.0 }
  0xfb   :  { %v201_v53 = vmax.f32 %v186_v49, 0.0 }
  0xfc   :  { %v206_v54 = vpack.c.bf16 %v200_v51, %v198_v50 }
  0xfd   :  { %v189_v55 = vpop.f32.mrb[4].mxu0  ;;  %v207_v56 = vpack.c.bf16 %v201_v53, %v199_v52 }
  0xfe   :  { %v190_v57 = vadd.f32 %v189_v55, %v46_v40  ;;  %v191_v58 = vpop.f32.mrb[5].mxu0 }
  0xff   :  { %v192_v59 = vadd.f32 %v191_v58, %v50_v41  ;;  %v193_v60 = vpop.f32.mrb[6].mxu0  ;;  %377 = vmatprep.mubr.bf16.mxu1 %v207_v56 }
 0x100   :  { %v194_v61 = vadd.f32 %v193_v60, %v46_v40  ;;  %v195_v62 = vpop.f32.mrb[7].mxu0  ;;  %378 = vmatmul.mubr.bf16.vlgmr.msra.gmra.mrb[0].mxu1 %v206_v54  ;;  %v202_v0 = vmax.f32 %v190_v57, 0.0 }
 0x101   :  { %v196_v63 = vadd.f32 %v195_v62, %v50_v41  ;;  %v203_v2 = vmax.f32 %v192_v59, 0.0 }
 0x102   :  { %v204_v1 = vmax.f32 %v194_v61, 0.0 }
 0x103   :  { %v205_v3 = vmax.f32 %v196_v63, 0.0 }
 0x104   :  { %v208_v4 = vpack.c.bf16 %v204_v1, %v202_v0 }
 0x105   :  { %v209_v5 = vpack.c.bf16 %v205_v3, %v203_v2 }
 0x107   :  { %385 = vmatprep.mubr.bf16.mxu1 %v209_v5 }
 0x108   :  { %386 = vmatmul.mubr.bf16.gmra.mrb[4].mxu1 %v208_v4 }
 0x1d3   :  { %v488_v6 = vpop.f32.mrb[0].mxu1 }
 0x1d4   :  { %v489_v7 = vpop.f32.mrb[1].mxu1 }
 0x1d5   :  { %v490_v8 = vadd.f32 %v489_v7, %v488_v6  ;;  %v491_v9 = vpop.f32.mrb[2].mxu1 }
 0x1d6   :  { %v492_v11 = vpop.f32.mrb[3].mxu1 }
 0x1d7   :  { %v493_v12 = vadd.f32 %v492_v11, %v491_v9  ;;  %v380_v13 = vadd.f32 %v490_v8, %v436_v10 }
 0x1d9   :  { %v383_v14 = vadd.f32 %v493_v12, %v436_v10 }
 0x1db   :  { %v464_v15 = vpack.c.bf16 %v383_v14, %v380_v13  ;;  %v494_v16 = vpop.f32.mrb[4].mxu1 }
 0x1dc   :  { %v495_v17 = vpop.f32.mrb[5].mxu1 }
 0x1dd   :  { %465 = vst [vmem:[%s693_s5] sm:$0xff] %v464_v15   ;;  %v496_v18 = vadd.f32 %v495_v17, %v494_v16  ;;  %v497_v19 = vpop.f32.mrb[6].mxu1 }
 0x1de   :  { %v498_v20 = vpop.f32.mrb[7].mxu1 }
 0x1df   :  { %v499_v21 = vadd.f32 %v498_v20, %v497_v19  ;;  %v388_v22 = vadd.f32 %v496_v18, %v436_v10 }
 0x1e1   :  { %v391_v23 = vadd.f32 %v499_v21, %v436_v10 }
 0x1e3   :  { %v469_v24 = vpack.c.bf16 %v391_v23, %v388_v22 }
 0x1e5   :  { %471 = vst [vmem:[%s693_s5 + $0x8] sm:$0xff] %v469_v24  }

// kernel: transformer_forward.69
= control target key start
LH: loop header
LB: loop body
LE: loop exit
PB: predicated region body
PF: predicated region fallthrough
CT: control target
= control target key end

     0   :  { %s349_s0 = inlined_call_operand.vmem [shape: bf16[32,128], index: 0, kind: input, shape index: {}]   ;;  %s350_s1 = inlined_call_operand.vmem [shape: bf16[128,128], index: 1, kind: input, shape index: {}]   ;;  %s351_s2 = inlined_call_operand.vmem [shape: f32[1,128], index: 2, kind: input, shape index: {}]   ;;  %s352_s3 = inlined_call_operand.hbm [shape: f32[32,128], index: 3, kind: output, shape index: {}]  }
   0x1   :  { %v247_v0 = vld [vmem:[%s350_s1] sm:$0xff]   ;;  %v248_v1 = vld [vmem:[%s350_s1 + $0x8] sm:$0xff]   ;;  %v249_v2 = vld [vmem:[%s350_s1 + $0x10] sm:$0xff]  }
   0x2   :  { %224 = vmatprep.subr.bf16.mxu0 %v247_v0  ;;  %v250_v3 = vld [vmem:[%s350_s1 + $0x18] sm:$0xff]   ;;  %v255_v4 = vld [vmem:[%s349_s0] sm:$0xff]  }
   0x3   :  { %225 = vmatpush3.bf16.msra.mxu0 %v247_v0  ;;  %240 = vmatprep.mubr.bf16.mxu0 %v255_v4 }
   0x4   :  { %226 = vmatprep.subr.bf16.mxu0 %v248_v1 }
   0x7   :  { %227 = vmatpush3.bf16.msra.mxu0 %v248_v1 }
   0x8   :  { %228 = vmatprep.subr.bf16.mxu0 %v249_v2 }
   0x9   :  { %8 = vsyncpa [#allocation4], 0  ;;  %v251_v5 = vld [vmem:[%s350_s1 + $0x20] sm:$0xff]   ;;  %v252_v6 = vld [vmem:[%s350_s1 + $0x28] sm:$0xff]   ;;  %s281_s7 = smov [#allocation3]  }
   0xa   :  { %v253_v7 = vld [vmem:[%s350_s1 + $0x30] sm:$0xff]   ;;  %v254_v8 = vld [vmem:[%s350_s1 + $0x38] sm:$0xff]   ;;  %v256_v9 = vld [vmem:[%s349_s0 + $0x8] sm:$0xff]   ;;  %s192_s8 = sshll.u32 %s281_s7, 4  ;;  %s193_s8 = int_to_ptr.vmem [resolvable:$true] %s192_s8 }
   0xb   :  { %229 = vmatpush3.bf16.msra.mxu0 %v249_v2  ;;  %v213_v10 = vld [vmem:[%s351_s2] ss:$0 sm:$0xff]  ;;  %s257_s0 = scalar_lea.vmem %s193_s8, 512  ;;  %p262_p1 = scmp.lt.s32.totalorder %s193_s8, %s193_s8 }
   0xc   :  { %230 = vmatprep.subr.bf16.mxu0 %v250_v3  ;;  %p258_p0 = scmp.ne.s32.totalorder %s193_s8, %s257_s0  ;;  %p263_p2 = scmp.lt.s32.totalorder %s257_s0, %s257_s0 }
   0xe   :  { %p264_p3 = por %p263_p2, %p262_p1 }
   0xf   :  { %231 = vmatpush3.bf16.msra.mxu0 %v250_v3 }
  0x10   :  { %232 = vmatprep.subr.bf16.mxu0 %v251_v5  ;;  %p265_p4 = pnand %p264_p3, %p258_p0 }
  0x13   :  { %233 = vmatpush3.bf16.msra.mxu0 %v251_v5 }
  0x14   :  { %234 = vmatprep.subr.bf16.mxu0 %v252_v6 }
  0x17   :  { %235 = vmatpush3.bf16.msra.mxu0 %v252_v6 }
  0x18   :  { %236 = vmatprep.subr.bf16.mxu0 %v253_v7 }
  0x1b   :  { %237 = vmatpush3.bf16.msra.mxu0 %v253_v7 }
  0x1c   :  { %238 = vmatprep.subr.bf16.mxu0 %v254_v8 }
  0x1f   :  { %239 = vmatpush3.bf16.msra.mxu0 %v254_v8 }
  0x22   :  { %241 = vmatmul.mubr.bf16.vlgmr.msra.gmra.mrb[0].mxu0 %v256_v9 }
  0xf5   :  { %v242_v11 = vpop.f32.mrb[0].mxu0 }
  0xf6   :  { %v181_v12 = vadd.f32 %v242_v11, %v213_v10  ;;  %v142_v13 = vpop.f32.mrb[1].mxu0 }
  0xf7   :  { %v179_v14 = vadd.f32 %v213_v10, %v142_v13  ;;  %v243_v15 = vpop.f32.mrb[2].mxu0 }
  0xf8   :  { %185 = vst [vmem:[#allocation3 + $0x10] sm:$0xff] %v181_v12  ;;  %v182_v16 = vadd.f32 %v243_v15, %v213_v10  ;;  %v145_v17 = vpop.f32.mrb[3].mxu0 }
  0xf9   :  { %183 = vst [vmem:[#allocation3] sm:$0xff] %v179_v14  ;;  %v180_v18 = vadd.f32 %v213_v10, %v145_v17 }
  0xfa   :  { %186 = vst [vmem:[#allocation3 + $0x18] sm:$0xff] %v182_v16 }
  0xfb   :  { %184 = vst [vmem:[#allocation3 + $0x8] sm:$0xff] %v180_v18 }
  0xfc   :  { %268 = shalt.err (!%p265_p4)
}
  0xfd   :  { %s269_s9 = scalar_lea.hbm %s352_s3, 512 }
  0xfe   :  { %p270_p5 = scmp.ne.s32.totalorder %s352_s3, %s269_s9  ;;  %p273_p6 = scmp.lt.u32.totalorder %s269_s9, %s352_s3 }
 0x100   :  { %p275_p7 = pnand %p273_p6, %p270_p5 }
 0x102   :  { %278 = shalt.err (!%p275_p7)
}
 0x103   :  { %s282_s14 = smov 128   ;;  %s283_s15 = smov 8  }
 0x104   :  { %198 = dma.vmem_to_hbm [thread:$0]  %s193_s8, 512, %s352_s3, [#allocation4], %s282_s14, %s282_s14, %s283_s15  }
 0x105   :  { %279 = dma.done.wait [#allocation4], 512  }
 0x106   :  { %280 = vsyncadd [#allocation4], 4294966784 }
 0x107   :  { %202 = vsyncpa [#allocation4], 1 }

// kernel: transformer_forward.52
= control target key start
LH: loop header
LB: loop body
LE: loop exit
PB: predicated region body
PF: predicated region fallthrough
CT: control target
= control target key end

     0   :  { %v348_v1 = vmov 0   ;;  %v229_v19 = vlaneseq  ;;  %s438_s1 = inlined_call_operand.vmem [shape: bf16[128,256], index: 1, kind: input, shape index: {}]   ;;  %s439_s0 = inlined_call_operand.vmem [shape: bf16[32,128], index: 0, kind: input, shape index: {}]   ;;  %s440_s2 = inlined_call_operand.vmem [shape: f32[1,256], index: 2, kind: input, shape index: {}]   ;;  %s441_s3 = inlined_call_operand.vmem [shape: bf16[32,256], index: 3, kind: output, shape index: {}]  }
   0x1   :  { %v322_v0 = vld [vmem:[%s438_s1 + $0x4] ss:$8 sps:$4 sm:$0xff]   ;;  %179 = vmatprep.mubr.bf16.mxu0 %v348_v1  ;;  %189 = vmatprep.mubr.bf16.mxu1 %v348_v1  ;;  %v324_v2 = vld [vmem:[%s438_s1] ss:$8 sps:$4 sm:$0xff]   ;;  %v325_v3 = vld [vmem:[%s438_s1 + $0x14] ss:$8 sps:$4 sm:$0xff]  }
   0x2   :  { %147 = vmatprep.subr.bf16.mxu0 %v322_v0  ;;  %305 = vmatprep.subr.bf16.mxu1 %v322_v0  ;;  %v327_v4 = vld [vmem:[%s438_s1 + $0x10] ss:$8 sps:$4 sm:$0xff]   ;;  %v328_v5 = vld [vmem:[%s438_s1 + $0x24] ss:$8 sps:$4 sm:$0xff]   ;;  %v330_v6 = vld [vmem:[%s438_s1 + $0x20] ss:$8 sps:$4 sm:$0xff]  }
   0x3   :  { %148 = vmatpush1.bf16.msra.mxu0 %v324_v2  ;;  %313 = vmatpush1.bf16.msra.mxu1 %v324_v2  ;;  %v331_v7 = vld [vmem:[%s438_s1 + $0x34] ss:$8 sps:$4 sm:$0xff]   ;;  %v333_v8 = vld [vmem:[%s438_s1 + $0x30] ss:$8 sps:$4 sm:$0xff]   ;;  %v334_v9 = vld [vmem:[%s438_s1 + $0x44] ss:$8 sps:$4 sm:$0xff]  }
   0x4   :  { %149 = vmatprep.subr.bf16.mxu0 %v325_v3  ;;  %306 = vmatprep.subr.bf16.mxu1 %v325_v3  ;;  %v336_v10 = vld [vmem:[%s438_s1 + $0x40] ss:$8 sps:$4 sm:$0xff]   ;;  %v337_v11 = vld [vmem:[%s438_s1 + $0x54] ss:$8 sps:$4 sm:$0xff]   ;;  %v339_v12 = vld [vmem:[%s438_s1 + $0x50] ss:$8 sps:$4 sm:$0xff]  }
   0x5   :  { %v340_v13 = vld [vmem:[%s438_s1 + $0x64] ss:$8 sps:$4 sm:$0xff]   ;;  %v342_v14 = vld [vmem:[%s438_s1 + $0x60] ss:$8 sps:$4 sm:$0xff]   ;;  %v343_v15 = vld [vmem:[%s438_s1 + $0x74] ss:$8 sps:$4 sm:$0xff]  }
   0x6   :  { %v345_v16 = vld [vmem:[%s438_s1 + $0x70] ss:$8 sps:$4 sm:$0xff]   ;;  %v346_v17 = vld [vmem:[%s439_s0] sm:$0xff]   ;;  %v347_v18 = vld [vmem:[%s439_s0 + $0x8] sm:$0xff]   ;;  %v230_v20 = vshrl.u32 %v229_v19, 7 }
   0x7   :  { %150 = vmatpush1.bf16.msra.mxu0 %v327_v4  ;;  %314 = vmatpush1.bf16.msra.mxu1 %v327_v4  ;;  %v227_v22 = vld [vmem:[%s440_s2] sm:$0x3] }
   0x8   :  { %151 = vmatprep.subr.bf16.mxu0 %v328_v5  ;;  %307 = vmatprep.subr.bf16.mxu1 %v328_v5  ;;  %v231_v21 = vsub.s32 0, %v230_v20  ;;  %v235_v23 = vsub.s32 1, %v230_v20 }
   0xa   :  { %v232_v24 = vrot.slane %v227_v22, %v231_v21  ;;  %v236_v25 = vrot.slane %v227_v22, %v235_v23 }
   0xb   :  { %152 = vmatpush1.bf16.msra.mxu0 %v330_v6  ;;  %315 = vmatpush1.bf16.msra.mxu1 %v330_v6 }
   0xc   :  { %153 = vmatprep.subr.bf16.mxu0 %v331_v7  ;;  %308 = vmatprep.subr.bf16.mxu1 %v331_v7 }
   0xf   :  { %154 = vmatpush1.bf16.msra.mxu0 %v333_v8  ;;  %316 = vmatpush1.bf16.msra.mxu1 %v333_v8 }
  0x10   :  { %155 = vmatprep.subr.bf16.mxu0 %v334_v9  ;;  %309 = vmatprep.subr.bf16.mxu1 %v334_v9 }
  0x13   :  { %156 = vmatpush1.bf16.msra.mxu0 %v336_v10  ;;  %317 = vmatpush1.bf16.msra.mxu1 %v336_v10 }
  0x14   :  { %157 = vmatprep.subr.bf16.mxu0 %v337_v11  ;;  %310 = vmatprep.subr.bf16.mxu1 %v337_v11 }
  0x17   :  { %158 = vmatpush1.bf16.msra.mxu0 %v339_v12  ;;  %318 = vmatpush1.bf16.msra.mxu1 %v339_v12 }
  0x18   :  { %159 = vmatprep.subr.bf16.mxu0 %v340_v13  ;;  %311 = vmatprep.subr.bf16.mxu1 %v340_v13 }
  0x1b   :  { %160 = vmatpush1.bf16.msra.mxu0 %v342_v14  ;;  %319 = vmatpush1.bf16.msra.mxu1 %v342_v14 }
  0x1c   :  { %161 = vmatprep.subr.bf16.mxu0 %v343_v15  ;;  %312 = vmatprep.subr.bf16.mxu1 %v343_v15 }
  0x1f   :  { %162 = vmatpush1.bf16.msra.mxu0 %v345_v16  ;;  %320 = vmatpush1.bf16.msra.mxu1 %v345_v16 }
  0x22   :  { %180 = vmatmul.mubr.bf16.vlgmr.msra.gmra.mrb[0].mxu0 %v346_v17  ;;  %190 = vmatmul.mubr.bf16.vlgmr.msra.gmra.mrb[0].mxu1 %v347_v18 }
  0xf5   :  { %v181_v26 = vpop.f32.mrb[0].mxu0  ;;  %v191_v27 = vpop.f32.mrb[0].mxu1 }
  0xf6   :  { %v239_v28 = vadd.f32 %v232_v24, %v181_v26  ;;  %v243_v29 = vadd.f32 %v232_v24, %v191_v27  ;;  %v183_v30 = vpop.f32.mrb[1].mxu0  ;;  %v193_v31 = vpop.f32.mrb[1].mxu1 }
  0xf7   :  { %v240_v32 = vadd.f32 %v236_v25, %v183_v30  ;;  %v244_v33 = vadd.f32 %v236_v25, %v193_v31  ;;  %v185_v34 = vpop.f32.mrb[2].mxu0  ;;  %v195_v35 = vpop.f32.mrb[2].mxu1 }
  0xf8   :  { %v241_v36 = vadd.f32 %v232_v24, %v185_v34  ;;  %v245_v37 = vadd.f32 %v232_v24, %v195_v35  ;;  %v187_v38 = vpop.f32.mrb[3].mxu0  ;;  %v197_v39 = vpop.f32.mrb[3].mxu1 }
  0xf9   :  { %v301_v40 = vpack.c.bf16 %v240_v32, %v239_v28  ;;  %v303_v41 = vpack.c.bf16 %v244_v33, %v243_v29  ;;  %v242_v42 = vadd.f32 %v236_v25, %v187_v38  ;;  %v246_v43 = vadd.f32 %v236_v25, %v197_v39 }
  0xfb   :  { %271 = vst [vmem:[%s441_s3] sm:$0xff] %v301_v40  ;;  %273 = vst [vmem:[%s441_s3 + $0x10] sm:$0xff] %v303_v41  ;;  %v302_v44 = vpack.c.bf16 %v242_v42, %v241_v36  ;;  %v304_v45 = vpack.c.bf16 %v246_v43, %v245_v37 }
  0xfd   :  { %272 = vst [vmem:[%s441_s3 + $0x8] sm:$0xff] %v302_v44  ;;  %274 = vst [vmem:[%s441_s3 + $0x18] sm:$0xff] %v304_v45 }

</bundles_post_ra>
